<compile_context>
chip_gen: v7x
topology: tpu7x:2x2x1
jax: 0.10.0
libtpu: 0.0.40
codegen_flags: <defaults>
</compile_context>

<pallas_src>
import functools

import jax
import jax.numpy as jnp
from jax.experimental import pallas as pl
from jax.experimental.pallas import tpu as pltpu


def _darts_cell_kernel(mix_ref, xe_ref, xtm_ref, xfm_ref,
                       wtaps_ref, bconv_ref,
                       wq_ref, bq_ref, wk_ref, bk_ref,
                       wv_ref, bv_ref, wo_ref, bo_ref,
                       out_ref, q_sc,
                       *, row_pitch, margin):
    f32 = jnp.float32
    bf16 = jnp.bfloat16
    C, LPAD = out_ref.shape            # feature-major tokens, LPAD = k*128

    # architecture mixture weights (softmax done on host, SMEM scalars)
    w_conv = mix_ref[0]
    w_attn = mix_ref[1]
    w_pool = mix_ref[2]

    # ---- ConvBlock + PoolBlock: 9 shifted taps, 9 tiny matmuls --------------
    conv_acc = jnp.zeros((C, LPAD), f32)
    pool_acc = jnp.zeros((C, LPAD), f32)
    x_tok = None                       # center tap = tokens of the padded grid
    t = 0
    for dh in (-1, 0, 1):
        for dw in (-1, 0, 1):
            off = margin + dh * row_pitch + dw
            tap = xe_ref[:, off:off + LPAD]                  # (C, LPAD) f32
            pool_acc = pool_acc + tap
            conv_acc = conv_acc + jnp.dot(
                wtaps_ref[t], tap.astype(bf16), preferred_element_type=f32)
            if dh == 0 and dw == 0:
                x_tok = tap
            t += 1
    conv = jnp.maximum(conv_acc + bconv_ref[...], 0.0)
    # conv + pool + attention residual written once (lane-dense store);
    # the attention output is accumulated into it per query block below.
    out_ref[...] = (w_conv * conv
                    + w_pool * (pool_acc * (1.0 / 9.0))
                    + w_attn * x_tok)

    # ---- TransformerBlock ----------------------------------------------------
    # keys/values from the 256 real tokens; queries from the padded 384 grid
    k_t = jnp.dot(xtm_ref[...], wk_ref[...],
                  preferred_element_type=f32) + bk_ref[...]          # (Nk, C)
    v_fm = jnp.dot(wv_ref[...], xfm_ref[...],
                   preferred_element_type=f32) + bv_ref[...]         # (C, Nk)
    q_sc[...] = jnp.dot(wq_ref[...], x_tok.astype(bf16),
                        preferred_element_type=f32) + bq_ref[...]    # (C, LPAD)

    k_bf = k_t.astype(bf16)
    v_bf = v_fm.astype(bf16)
    wo_bf = wo_ref[...]
    bo = bo_ref[...]
    scale = float(C) ** -0.5

    @pl.loop(0, LPAD // 128)
    def _(j):
        off = pl.multiple_of(j * 128, 128)
        q_blk = q_sc[:, pl.ds(off, 128)].astype(bf16)                # (C, 128)
        # key-major scores: softmax reduction runs along the sublane axis
        s = jnp.dot(k_bf, q_blk, preferred_element_type=f32) * scale  # (Nk,128)
        m = jnp.max(s, axis=0, keepdims=True)                         # (1, 128)
        p = jnp.exp(s - m)
        denom = jnp.sum(p, axis=0, keepdims=True)
        attn = jnp.dot(v_bf, p.astype(bf16),
                       preferred_element_type=f32)                    # (C, 128)
        attn = attn * pl.reciprocal(denom, approx=True)
        o_blk = jnp.dot(wo_bf, attn.astype(bf16),
                        preferred_element_type=f32) + bo
        out_ref[:, pl.ds(off, 128)] = (out_ref[:, pl.ds(off, 128)]
                                       + w_attn * o_blk)


def darts_cell_forward(x_nchw, params):
    """DARTSCell forward. x_nchw: (B, C, H, W) float32 -> (B, C, H, W) float32."""
    x = x_nchw.astype(jnp.float32)
    B, C, H, W = x.shape
    HP, WP = H + 2, W + 2
    L = HP * WP                              # tokens on the zero-padded grid
    LPAD = ((L + 127) // 128) * 128          # lane-dense compute width (k*128)
    margin = WP + 1                          # largest |tap offset| of a 3x3 stencil
    Lext = LPAD + 2 * margin
    N = H * W                                # real tokens (attention keys)
    bf16 = jnp.bfloat16

    # padded + flattened input; every conv tap is a contiguous static lane slice
    xe = jnp.pad(x, ((0, 0), (0, 0), (1, 1), (1, 1))).reshape(B, C, L)
    xe = jnp.pad(xe, ((0, 0), (0, 0), (0, LPAD - L)))                 # (B, C, LPAD)
    xe_ext = jnp.pad(xe, ((0, 0), (0, 0), (margin, margin)))          # (B, C, Lext)

    # real tokens in both layouts (tiny bf16 copies) for K/V projections
    x_fm = x.reshape(B, C, N).astype(bf16)                            # (B, C, N)
    x_tm = jnp.transpose(x.reshape(B, C, N), (0, 2, 1)).astype(bf16)  # (B, N, C)

    # architecture softmax hoisted to the wrapper
    mix = jax.nn.softmax(params['alpha']).astype(jnp.float32)         # (3,)

    # conv weight -> per-tap (C_out, C_in) matrices, tap-major
    wtaps = jnp.transpose(params['w_conv'], (0, 1, 3, 2)).reshape(9, C, C).astype(bf16)

    kernel = functools.partial(_darts_cell_kernel, row_pitch=WP, margin=margin)

    out_flat = pl.pallas_call(
        kernel,
        out_shape=jax.ShapeDtypeStruct((B, C, LPAD), jnp.float32),
        grid=(B,),
        in_specs=[
            pl.BlockSpec(memory_space=pltpu.MemorySpace.SMEM),        # mix (3,)
            pl.BlockSpec((None, C, Lext), lambda b: (b, 0, 0)),       # padded tokens
            pl.BlockSpec((None, N, C), lambda b: (b, 0, 0)),          # real tokens, token-major
            pl.BlockSpec((None, C, N), lambda b: (b, 0, 0)),          # real tokens, feature-major
            pl.BlockSpec((9, C, C), lambda b: (0, 0, 0)),             # per-tap conv weights
            pl.BlockSpec((C, 1), lambda b: (0, 0)),                   # conv bias (col)
            pl.BlockSpec((C, C), lambda b: (0, 0)),                   # wq^T
            pl.BlockSpec((C, 1), lambda b: (0, 0)),                   # bq (col)
            pl.BlockSpec((C, C), lambda b: (0, 0)),                   # wk
            pl.BlockSpec((1, C), lambda b: (0, 0)),                   # bk (row)
            pl.BlockSpec((C, C), lambda b: (0, 0)),                   # wv^T
            pl.BlockSpec((C, 1), lambda b: (0, 0)),                   # bv (col)
            pl.BlockSpec((C, C), lambda b: (0, 0)),                   # wo^T
            pl.BlockSpec((C, 1), lambda b: (0, 0)),                   # bo (col)
        ],
        out_specs=pl.BlockSpec((None, C, LPAD), lambda b: (b, 0, 0)),
        scratch_shapes=[pltpu.VMEM((C, LPAD), jnp.float32)],          # q (queries)
        compiler_params=pltpu.CompilerParams(
            dimension_semantics=("parallel",)),
    )(mix, xe_ext, x_tm, x_fm,
      wtaps, params['b_conv'].reshape(C, 1),
      params['wq'].T.astype(bf16), params['bq'].reshape(C, 1),
      params['wk'].astype(bf16), params['bk'].reshape(1, C),
      params['wv'].T.astype(bf16), params['bv'].reshape(C, 1),
      params['wo'].T.astype(bf16), params['bo'].reshape(C, 1))

    # crop the padded-grid border and restore (B, C, H, W)
    return out_flat[:, :, :L].reshape(B, C, HP, WP)[:, :, 1:1 + H, 1:1 + W]


def darts_cell_ref(x_nchw, params):
    """Pure-JAX reference with the same math (bf16 MXU operands, f32 accum)."""
    x = x_nchw.astype(jnp.float32)
    B, C, H, W = x.shape
    N = H * W
    bf = jnp.bfloat16
    mix = jax.nn.softmax(params['alpha'])

    xp = jnp.pad(x, ((0, 0), (0, 0), (1, 1), (1, 1)))
    patches = [xp[:, :, kh:kh + H, kw:kw + W].reshape(B, C, N)
               for kh in range(3) for kw in range(3)]
    pool = sum(patches) * (1.0 / 9.0)                                    # (B, C, N)
    pmat = jnp.concatenate(patches, axis=1)                              # (B, 9C, N)
    wr = jnp.transpose(params['w_conv'], (3, 0, 1, 2)).reshape(C, 9 * C)
    conv = jnp.einsum('ok,bkn->bon', wr.astype(bf), pmat.astype(bf),
                      preferred_element_type=jnp.float32)
    conv = jnp.maximum(conv + params['b_conv'].reshape(1, C, 1), 0.0)

    tok = x.reshape(B, C, N)                                             # feature-major tokens
    q = jnp.einsum('co,bcn->bon', params['wq'].astype(bf), tok.astype(bf),
                   preferred_element_type=jnp.float32) + params['bq'].reshape(1, C, 1)
    k = jnp.einsum('co,bcn->bon', params['wk'].astype(bf), tok.astype(bf),
                   preferred_element_type=jnp.float32) + params['bk'].reshape(1, C, 1)
    v = jnp.einsum('co,bcn->bon', params['wv'].astype(bf), tok.astype(bf),
                   preferred_element_type=jnp.float32) + params['bv'].reshape(1, C, 1)
    s = jnp.einsum('bcn,bcm->bnm', q.astype(bf), k.astype(bf),
                   preferred_element_type=jnp.float32) * (float(C) ** -0.5)
    p = jax.nn.softmax(s, axis=-1)
    attn = jnp.einsum('bcm,bnm->bcn', v.astype(bf), p.astype(bf),
                      preferred_element_type=jnp.float32)
    o = jnp.einsum('co,bcn->bon', params['wo'].astype(bf), attn.astype(bf),
                   preferred_element_type=jnp.float32) + params['bo'].reshape(1, C, 1)
    trans = tok + o

    out = mix[0] * conv + mix[1] * trans + mix[2] * pool
    return out.reshape(B, C, H, W)


def make_params(key, channels):
    ks = jax.random.split(key, 13)
    C = channels
    scale = 0.1
    return {
        'alpha':  jax.random.normal(ks[0], (3,), jnp.float32) * 0.5,
        'w_conv': jax.random.normal(ks[1], (3, 3, C, C), jnp.float32) * scale,
        'b_conv': jax.random.normal(ks[2], (1, C), jnp.float32) * scale,
        'wq': jax.random.normal(ks[3], (C, C), jnp.float32) * scale,
        'bq': jax.random.normal(ks[4], (1, C), jnp.float32) * scale,
        'wk': jax.random.normal(ks[5], (C, C), jnp.float32) * scale,
        'bk': jax.random.normal(ks[6], (1, C), jnp.float32) * scale,
        'wv': jax.random.normal(ks[7], (C, C), jnp.float32) * scale,
        'bv': jax.random.normal(ks[8], (1, C), jnp.float32) * scale,
        'wo': jax.random.normal(ks[9], (C, C), jnp.float32) * scale,
        'bo': jax.random.normal(ks[10], (1, C), jnp.float32) * scale,
    }


if __name__ == "__main__":
    key = jax.random.PRNGKey(0)
    pkey, xkey = jax.random.split(key)

    B, C, H, W = 2, 4, 16, 16
    params = make_params(pkey, C)
    x = jax.random.normal(xkey, (B, C, H, W), jnp.float32)

    out = darts_cell_forward(x, params)
    out = jax.block_until_ready(out)

    ref = darts_cell_ref(x, params)
    assert out.shape == (B, C, H, W)
    max_err = float(jnp.max(jnp.abs(out - ref)))
    assert jnp.allclose(out, ref, rtol=5e-3, atol=5e-3), (
        f"mismatch vs JAX reference (max abs err {max_err})")

    print("KERNEL_OK")
</pallas_src>

<mosaic_0001>
module attributes {stable_mosaic.version = 11 : i64} {
  func.func @_darts_cell_kernel(%arg0: i32, %arg1: memref<3xf32, #tpu.memory_space<smem>>, %arg2: memref<1x4x422xf32, #tpu.memory_space<vmem>>, %arg3: memref<1x256x4xbf16, #tpu.memory_space<vmem>>, %arg4: memref<1x4x256xbf16, #tpu.memory_space<vmem>>, %arg5: memref<9x4x4xbf16, #tpu.memory_space<vmem>>, %arg6: memref<4x1xf32, #tpu.memory_space<vmem>>, %arg7: memref<4x4xbf16, #tpu.memory_space<vmem>>, %arg8: memref<4x1xf32, #tpu.memory_space<vmem>>, %arg9: memref<4x4xbf16, #tpu.memory_space<vmem>>, %arg10: memref<1x4xf32, #tpu.memory_space<vmem>>, %arg11: memref<4x4xbf16, #tpu.memory_space<vmem>>, %arg12: memref<4x1xf32, #tpu.memory_space<vmem>>, %arg13: memref<4x4xbf16, #tpu.memory_space<vmem>>, %arg14: memref<4x1xf32, #tpu.memory_space<vmem>>, %arg15: memref<1x4x384xf32, #tpu.memory_space<vmem>>, %arg16: memref<4x384xf32, #tpu.memory_space<vmem>>) attributes {dimension_semantics = [#tpu.dimension_semantics<parallel>], iteration_bounds = array<i64: 2>, scalar_prefetch = 0 : i64, scratch_operands = 1 : i64, tpu.core_type = #tpu.core_type<tc>, window_params = [{transform_indices = @transform_0, window_bounds = array<i64: 3>}, {transform_indices = @transform_1, window_bounds = array<i64: 1, 4, 422>}, {transform_indices = @transform_2, window_bounds = array<i64: 1, 256, 4>}, {transform_indices = @transform_3, window_bounds = array<i64: 1, 4, 256>}, {pipeline_mode = #tpu.pipeline_mode<synchronous>, transform_indices = @transform_4, window_bounds = array<i64: 9, 4, 4>}, {pipeline_mode = #tpu.pipeline_mode<synchronous>, transform_indices = @transform_5, window_bounds = array<i64: 4, 1>}, {pipeline_mode = #tpu.pipeline_mode<synchronous>, transform_indices = @transform_6, window_bounds = array<i64: 4, 4>}, {pipeline_mode = #tpu.pipeline_mode<synchronous>, transform_indices = @transform_7, window_bounds = array<i64: 4, 1>}, {pipeline_mode = #tpu.pipeline_mode<synchronous>, transform_indices = @transform_8, window_bounds = array<i64: 4, 4>}, {pipeline_mode = #tpu.pipeline_mode<synchronous>, transform_indices = @transform_9, window_bounds = array<i64: 1, 4>}, {pipeline_mode = #tpu.pipeline_mode<synchronous>, transform_indices = @transform_10, window_bounds = array<i64: 4, 4>}, {pipeline_mode = #tpu.pipeline_mode<synchronous>, transform_indices = @transform_11, window_bounds = array<i64: 4, 1>}, {pipeline_mode = #tpu.pipeline_mode<synchronous>, transform_indices = @transform_12, window_bounds = array<i64: 4, 4>}, {pipeline_mode = #tpu.pipeline_mode<synchronous>, transform_indices = @transform_13, window_bounds = array<i64: 4, 1>}, {transform_indices = @transform_14, window_bounds = array<i64: 1, 4, 384>}]} {
    %c0 = arith.constant 0 : index
    %0 = memref.load %arg1[%c0] : memref<3xf32, #tpu.memory_space<smem>>
    %c1 = arith.constant 1 : index
    %1 = memref.load %arg1[%c1] : memref<3xf32, #tpu.memory_space<smem>>
    %c2 = arith.constant 2 : index
    %2 = memref.load %arg1[%c2] : memref<3xf32, #tpu.memory_space<smem>>
    %cst = arith.constant 0.000000e+00 : f32
    %3 = vector.broadcast %cst : f32 to vector<4x384xf32>
    %cst_0 = arith.constant 0.000000e+00 : f32
    %4 = vector.broadcast %cst_0 : f32 to vector<4x384xf32>
    %c0_1 = arith.constant 0 : index
    %c0_2 = arith.constant 0 : index
    %c0_3 = arith.constant 0 : index
    %5 = vector.load %arg2[%c0_1, %c0_2, %c0_3] : memref<1x4x422xf32, #tpu.memory_space<vmem>>, vector<1x4x384xf32>
    %6 = vector.shape_cast %5 : vector<1x4x384xf32> to vector<4x384xf32>
    %7 = arith.addf %4, %6 : vector<4x384xf32>
    %c0_4 = arith.constant 0 : index
    %c0_5 = arith.constant 0 : index
    %c0_6 = arith.constant 0 : index
    %8 = vector.load %arg5[%c0_4, %c0_5, %c0_6] : memref<9x4x4xbf16, #tpu.memory_space<vmem>>, vector<1x4x4xbf16>
    %9 = vector.shape_cast %8 : vector<1x4x4xbf16> to vector<4x4xbf16>
    %10 = arith.truncf %6 : vector<4x384xf32> to vector<4x384xbf16>
    %cst_7 = arith.constant dense<0.000000e+00> : vector<4x384xf32>
    %11 = tpu.matmul %9, %10, %cst_7 {dimension_numbers = #tpu.dot_dimension_numbers<[1], [0], [0], [1], [0, 0, 1, 1], [], []>} : vector<4x4xbf16>, vector<4x384xbf16>, vector<4x384xf32> -> vector<4x384xf32>
    %12 = arith.addf %3, %11 : vector<4x384xf32>
    %c0_8 = arith.constant 0 : index
    %c0_9 = arith.constant 0 : index
    %c1_10 = arith.constant 1 : index
    %13 = vector.load %arg2[%c0_8, %c0_9, %c1_10] : memref<1x4x422xf32, #tpu.memory_space<vmem>>, vector<1x4x384xf32>
    %14 = vector.shape_cast %13 : vector<1x4x384xf32> to vector<4x384xf32>
    %15 = arith.addf %7, %14 : vector<4x384xf32>
    %c1_11 = arith.constant 1 : index
    %c0_12 = arith.constant 0 : index
    %c0_13 = arith.constant 0 : index
    %16 = vector.load %arg5[%c1_11, %c0_12, %c0_13] : memref<9x4x4xbf16, #tpu.memory_space<vmem>>, vector<1x4x4xbf16>
    %17 = vector.shape_cast %16 : vector<1x4x4xbf16> to vector<4x4xbf16>
    %18 = arith.truncf %14 : vector<4x384xf32> to vector<4x384xbf16>
    %cst_14 = arith.constant dense<0.000000e+00> : vector<4x384xf32>
    %19 = tpu.matmul %17, %18, %cst_14 {dimension_numbers = #tpu.dot_dimension_numbers<[1], [0], [0], [1], [0, 0, 1, 1], [], []>} : vector<4x4xbf16>, vector<4x384xbf16>, vector<4x384xf32> -> vector<4x384xf32>
    %20 = arith.addf %12, %19 : vector<4x384xf32>
    %c0_15 = arith.constant 0 : index
    %c0_16 = arith.constant 0 : index
    %c2_17 = arith.constant 2 : index
    %21 = vector.load %arg2[%c0_15, %c0_16, %c2_17] : memref<1x4x422xf32, #tpu.memory_space<vmem>>, vector<1x4x384xf32>
    %22 = vector.shape_cast %21 : vector<1x4x384xf32> to vector<4x384xf32>
    %23 = arith.addf %15, %22 : vector<4x384xf32>
    %c2_18 = arith.constant 2 : index
    %c0_19 = arith.constant 0 : index
    %c0_20 = arith.constant 0 : index
    %24 = vector.load %arg5[%c2_18, %c0_19, %c0_20] : memref<9x4x4xbf16, #tpu.memory_space<vmem>>, vector<1x4x4xbf16>
    %25 = vector.shape_cast %24 : vector<1x4x4xbf16> to vector<4x4xbf16>
    %26 = arith.truncf %22 : vector<4x384xf32> to vector<4x384xbf16>
    %cst_21 = arith.constant dense<0.000000e+00> : vector<4x384xf32>
    %27 = tpu.matmul %25, %26, %cst_21 {dimension_numbers = #tpu.dot_dimension_numbers<[1], [0], [0], [1], [0, 0, 1, 1], [], []>} : vector<4x4xbf16>, vector<4x384xbf16>, vector<4x384xf32> -> vector<4x384xf32>
    %28 = arith.addf %20, %27 : vector<4x384xf32>
    %c0_22 = arith.constant 0 : index
    %c0_23 = arith.constant 0 : index
    %c18 = arith.constant 18 : index
    %29 = vector.load %arg2[%c0_22, %c0_23, %c18] : memref<1x4x422xf32, #tpu.memory_space<vmem>>, vector<1x4x384xf32>
    %30 = vector.shape_cast %29 : vector<1x4x384xf32> to vector<4x384xf32>
    %31 = arith.addf %23, %30 : vector<4x384xf32>
    %c3 = arith.constant 3 : index
    %c0_24 = arith.constant 0 : index
    %c0_25 = arith.constant 0 : index
    %32 = vector.load %arg5[%c3, %c0_24, %c0_25] : memref<9x4x4xbf16, #tpu.memory_space<vmem>>, vector<1x4x4xbf16>
    %33 = vector.shape_cast %32 : vector<1x4x4xbf16> to vector<4x4xbf16>
    %34 = arith.truncf %30 : vector<4x384xf32> to vector<4x384xbf16>
    %cst_26 = arith.constant dense<0.000000e+00> : vector<4x384xf32>
    %35 = tpu.matmul %33, %34, %cst_26 {dimension_numbers = #tpu.dot_dimension_numbers<[1], [0], [0], [1], [0, 0, 1, 1], [], []>} : vector<4x4xbf16>, vector<4x384xbf16>, vector<4x384xf32> -> vector<4x384xf32>
    %36 = arith.addf %28, %35 : vector<4x384xf32>
    %c0_27 = arith.constant 0 : index
    %c0_28 = arith.constant 0 : index
    %c19 = arith.constant 19 : index
    %37 = vector.load %arg2[%c0_27, %c0_28, %c19] : memref<1x4x422xf32, #tpu.memory_space<vmem>>, vector<1x4x384xf32>
    %38 = vector.shape_cast %37 : vector<1x4x384xf32> to vector<4x384xf32>
    %39 = arith.addf %31, %38 : vector<4x384xf32>
    %c4 = arith.constant 4 : index
    %c0_29 = arith.constant 0 : index
    %c0_30 = arith.constant 0 : index
    %40 = vector.load %arg5[%c4, %c0_29, %c0_30] : memref<9x4x4xbf16, #tpu.memory_space<vmem>>, vector<1x4x4xbf16>
    %41 = vector.shape_cast %40 : vector<1x4x4xbf16> to vector<4x4xbf16>
    %42 = arith.truncf %38 : vector<4x384xf32> to vector<4x384xbf16>
    %cst_31 = arith.constant dense<0.000000e+00> : vector<4x384xf32>
    %43 = tpu.matmul %41, %42, %cst_31 {dimension_numbers = #tpu.dot_dimension_numbers<[1], [0], [0], [1], [0, 0, 1, 1], [], []>} : vector<4x4xbf16>, vector<4x384xbf16>, vector<4x384xf32> -> vector<4x384xf32>
    %44 = arith.addf %36, %43 : vector<4x384xf32>
    %c0_32 = arith.constant 0 : index
    %c0_33 = arith.constant 0 : index
    %c20 = arith.constant 20 : index
    %45 = vector.load %arg2[%c0_32, %c0_33, %c20] : memref<1x4x422xf32, #tpu.memory_space<vmem>>, vector<1x4x384xf32>
    %46 = vector.shape_cast %45 : vector<1x4x384xf32> to vector<4x384xf32>
    %47 = arith.addf %39, %46 : vector<4x384xf32>
    %c5 = arith.constant 5 : index
    %c0_34 = arith.constant 0 : index
    %c0_35 = arith.constant 0 : index
    %48 = vector.load %arg5[%c5, %c0_34, %c0_35] : memref<9x4x4xbf16, #tpu.memory_space<vmem>>, vector<1x4x4xbf16>
    %49 = vector.shape_cast %48 : vector<1x4x4xbf16> to vector<4x4xbf16>
    %50 = arith.truncf %46 : vector<4x384xf32> to vector<4x384xbf16>
    %cst_36 = arith.constant dense<0.000000e+00> : vector<4x384xf32>
    %51 = tpu.matmul %49, %50, %cst_36 {dimension_numbers = #tpu.dot_dimension_numbers<[1], [0], [0], [1], [0, 0, 1, 1], [], []>} : vector<4x4xbf16>, vector<4x384xbf16>, vector<4x384xf32> -> vector<4x384xf32>
    %52 = arith.addf %44, %51 : vector<4x384xf32>
    %c0_37 = arith.constant 0 : index
    %c0_38 = arith.constant 0 : index
    %c36 = arith.constant 36 : index
    %53 = vector.load %arg2[%c0_37, %c0_38, %c36] : memref<1x4x422xf32, #tpu.memory_space<vmem>>, vector<1x4x384xf32>
    %54 = vector.shape_cast %53 : vector<1x4x384xf32> to vector<4x384xf32>
    %55 = arith.addf %47, %54 : vector<4x384xf32>
    %c6 = arith.constant 6 : index
    %c0_39 = arith.constant 0 : index
    %c0_40 = arith.constant 0 : index
    %56 = vector.load %arg5[%c6, %c0_39, %c0_40] : memref<9x4x4xbf16, #tpu.memory_space<vmem>>, vector<1x4x4xbf16>
    %57 = vector.shape_cast %56 : vector<1x4x4xbf16> to vector<4x4xbf16>
    %58 = arith.truncf %54 : vector<4x384xf32> to vector<4x384xbf16>
    %cst_41 = arith.constant dense<0.000000e+00> : vector<4x384xf32>
    %59 = tpu.matmul %57, %58, %cst_41 {dimension_numbers = #tpu.dot_dimension_numbers<[1], [0], [0], [1], [0, 0, 1, 1], [], []>} : vector<4x4xbf16>, vector<4x384xbf16>, vector<4x384xf32> -> vector<4x384xf32>
    %60 = arith.addf %52, %59 : vector<4x384xf32>
    %c0_42 = arith.constant 0 : index
    %c0_43 = arith.constant 0 : index
    %c37 = arith.constant 37 : index
    %61 = vector.load %arg2[%c0_42, %c0_43, %c37] : memref<1x4x422xf32, #tpu.memory_space<vmem>>, vector<1x4x384xf32>
    %62 = vector.shape_cast %61 : vector<1x4x384xf32> to vector<4x384xf32>
    %63 = arith.addf %55, %62 : vector<4x384xf32>
    %c7 = arith.constant 7 : index
    %c0_44 = arith.constant 0 : index
    %c0_45 = arith.constant 0 : index
    %64 = vector.load %arg5[%c7, %c0_44, %c0_45] : memref<9x4x4xbf16, #tpu.memory_space<vmem>>, vector<1x4x4xbf16>
    %65 = vector.shape_cast %64 : vector<1x4x4xbf16> to vector<4x4xbf16>
    %66 = arith.truncf %62 : vector<4x384xf32> to vector<4x384xbf16>
    %cst_46 = arith.constant dense<0.000000e+00> : vector<4x384xf32>
    %67 = tpu.matmul %65, %66, %cst_46 {dimension_numbers = #tpu.dot_dimension_numbers<[1], [0], [0], [1], [0, 0, 1, 1], [], []>} : vector<4x4xbf16>, vector<4x384xbf16>, vector<4x384xf32> -> vector<4x384xf32>
    %68 = arith.addf %60, %67 : vector<4x384xf32>
    %c0_47 = arith.constant 0 : index
    %c0_48 = arith.constant 0 : index
    %c38 = arith.constant 38 : index
    %69 = vector.load %arg2[%c0_47, %c0_48, %c38] : memref<1x4x422xf32, #tpu.memory_space<vmem>>, vector<1x4x384xf32>
    %70 = vector.shape_cast %69 : vector<1x4x384xf32> to vector<4x384xf32>
    %71 = arith.addf %63, %70 : vector<4x384xf32>
    %c8 = arith.constant 8 : index
    %c0_49 = arith.constant 0 : index
    %c0_50 = arith.constant 0 : index
    %72 = vector.load %arg5[%c8, %c0_49, %c0_50] : memref<9x4x4xbf16, #tpu.memory_space<vmem>>, vector<1x4x4xbf16>
    %73 = vector.shape_cast %72 : vector<1x4x4xbf16> to vector<4x4xbf16>
    %74 = arith.truncf %70 : vector<4x384xf32> to vector<4x384xbf16>
    %cst_51 = arith.constant dense<0.000000e+00> : vector<4x384xf32>
    %75 = tpu.matmul %73, %74, %cst_51 {dimension_numbers = #tpu.dot_dimension_numbers<[1], [0], [0], [1], [0, 0, 1, 1], [], []>} : vector<4x4xbf16>, vector<4x384xbf16>, vector<4x384xf32> -> vector<4x384xf32>
    %76 = arith.addf %68, %75 : vector<4x384xf32>
    %c0_52 = arith.constant 0 : index
    %c0_53 = arith.constant 0 : index
    %77 = vector.load %arg6[%c0_52, %c0_53] : memref<4x1xf32, #tpu.memory_space<vmem>>, vector<4x1xf32>
    %78 = vector.broadcast %77 : vector<4x1xf32> to vector<4x384xf32>
    %79 = arith.addf %76, %78 : vector<4x384xf32>
    %cst_54 = arith.constant 0.000000e+00 : f32
    %80 = vector.broadcast %cst_54 : f32 to vector<4x384xf32>
    %81 = arith.maximumf %79, %80 : vector<4x384xf32>
    %82 = vector.broadcast %0 : f32 to vector<4x384xf32>
    %83 = arith.mulf %82, %81 : vector<4x384xf32>
    %cst_55 = arith.constant 0.111111112 : f32
    %84 = vector.broadcast %cst_55 : f32 to vector<4x384xf32>
    %85 = arith.mulf %71, %84 : vector<4x384xf32>
    %86 = vector.broadcast %2 : f32 to vector<4x384xf32>
    %87 = arith.mulf %86, %85 : vector<4x384xf32>
    %88 = arith.addf %83, %87 : vector<4x384xf32>
    %89 = vector.broadcast %1 : f32 to vector<4x384xf32>
    %90 = arith.mulf %89, %38 : vector<4x384xf32>
    %91 = arith.addf %88, %90 : vector<4x384xf32>
    %c0_56 = arith.constant 0 : index
    %c0_57 = arith.constant 0 : index
    %c0_58 = arith.constant 0 : index
    %92 = vector.load %arg15[%c0_56, %c0_57, %c0_58] : memref<1x4x384xf32, #tpu.memory_space<vmem>>, vector<1x4x384xf32>
    %93 = vector.shape_cast %92 : vector<1x4x384xf32> to vector<4x384xf32>
    %94 = vector.shape_cast %91 : vector<4x384xf32> to vector<1x4x384xf32>
    tpu.vector_store %arg15[%c0_56, %c0_57, %c0_58], %94 {strides = array<i32>} : memref<1x4x384xf32, #tpu.memory_space<vmem>>, vector<1x4x384xf32>,
    %c0_59 = arith.constant 0 : index
    %c0_60 = arith.constant 0 : index
    %c0_61 = arith.constant 0 : index
    %95 = vector.load %arg3[%c0_59, %c0_60, %c0_61] : memref<1x256x4xbf16, #tpu.memory_space<vmem>>, vector<1x256x4xbf16>
    %96 = vector.shape_cast %95 : vector<1x256x4xbf16> to vector<256x4xbf16>
    %c0_62 = arith.constant 0 : index
    %c0_63 = arith.constant 0 : index
    %97 = vector.load %arg9[%c0_62, %c0_63] : memref<4x4xbf16, #tpu.memory_space<vmem>>, vector<4x4xbf16>
    %cst_64 = arith.constant dense<0.000000e+00> : vector<256x4xf32>
    %98 = tpu.matmul %96, %97, %cst_64 {dimension_numbers = #tpu.dot_dimension_numbers<[1], [0], [0], [1], [0, 0, 1, 1], [], []>} : vector<256x4xbf16>, vector<4x4xbf16>, vector<256x4xf32> -> vector<256x4xf32>
    %c0_65 = arith.constant 0 : index
    %c0_66 = arith.constant 0 : index
    %99 = vector.load %arg10[%c0_65, %c0_66] : memref<1x4xf32, #tpu.memory_space<vmem>>, vector<1x4xf32>
    %100 = vector.broadcast %99 : vector<1x4xf32> to vector<256x4xf32>
    %101 = arith.addf %98, %100 : vector<256x4xf32>
    %c0_67 = arith.constant 0 : index
    %c0_68 = arith.constant 0 : index
    %102 = vector.load %arg11[%c0_67, %c0_68] : memref<4x4xbf16, #tpu.memory_space<vmem>>, vector<4x4xbf16>
    %c0_69 = arith.constant 0 : index
    %c0_70 = arith.constant 0 : index
    %c0_71 = arith.constant 0 : index
    %103 = vector.load %arg4[%c0_69, %c0_70, %c0_71] : memref<1x4x256xbf16, #tpu.memory_space<vmem>>, vector<1x4x256xbf16>
    %104 = vector.shape_cast %103 : vector<1x4x256xbf16> to vector<4x256xbf16>
    %cst_72 = arith.constant dense<0.000000e+00> : vector<4x256xf32>
    %105 = tpu.matmul %102, %104, %cst_72 {dimension_numbers = #tpu.dot_dimension_numbers<[1], [0], [0], [1], [0, 0, 1, 1], [], []>} : vector<4x4xbf16>, vector<4x256xbf16>, vector<4x256xf32> -> vector<4x256xf32>
    %c0_73 = arith.constant 0 : index
    %c0_74 = arith.constant 0 : index
    %106 = vector.load %arg12[%c0_73, %c0_74] : memref<4x1xf32, #tpu.memory_space<vmem>>, vector<4x1xf32>
    %107 = vector.broadcast %106 : vector<4x1xf32> to vector<4x256xf32>
    %108 = arith.addf %105, %107 : vector<4x256xf32>
    %c0_75 = arith.constant 0 : index
    %c0_76 = arith.constant 0 : index
    %109 = vector.load %arg7[%c0_75, %c0_76] : memref<4x4xbf16, #tpu.memory_space<vmem>>, vector<4x4xbf16>
    %110 = arith.truncf %38 : vector<4x384xf32> to vector<4x384xbf16>
    %cst_77 = arith.constant dense<0.000000e+00> : vector<4x384xf32>
    %111 = tpu.matmul %109, %110, %cst_77 {dimension_numbers = #tpu.dot_dimension_numbers<[1], [0], [0], [1], [0, 0, 1, 1], [], []>} : vector<4x4xbf16>, vector<4x384xbf16>, vector<4x384xf32> -> vector<4x384xf32>
    %c0_78 = arith.constant 0 : index
    %c0_79 = arith.constant 0 : index
    %112 = vector.load %arg8[%c0_78, %c0_79] : memref<4x1xf32, #tpu.memory_space<vmem>>, vector<4x1xf32>
    %113 = vector.broadcast %112 : vector<4x1xf32> to vector<4x384xf32>
    %114 = arith.addf %111, %113 : vector<4x384xf32>
    %c0_80 = arith.constant 0 : index
    %c0_81 = arith.constant 0 : index
    %115 = vector.load %arg16[%c0_80, %c0_81] : memref<4x384xf32, #tpu.memory_space<vmem>>, vector<4x384xf32>
    tpu.vector_store %arg16[%c0_80, %c0_81], %114 {strides = array<i32>} : memref<4x384xf32, #tpu.memory_space<vmem>>, vector<4x384xf32>,
    %116 = arith.truncf %101 : vector<256x4xf32> to vector<256x4xbf16>
    %117 = arith.truncf %108 : vector<4x256xf32> to vector<4x256xbf16>
    %c0_82 = arith.constant 0 : index
    %c0_83 = arith.constant 0 : index
    %118 = vector.load %arg13[%c0_82, %c0_83] : memref<4x4xbf16, #tpu.memory_space<vmem>>, vector<4x4xbf16>
    %c0_84 = arith.constant 0 : index
    %c0_85 = arith.constant 0 : index
    %119 = vector.load %arg14[%c0_84, %c0_85] : memref<4x1xf32, #tpu.memory_space<vmem>>, vector<4x1xf32>
    %c0_i32 = arith.constant 0 : i32
    %c3_i32 = arith.constant 3 : i32
    %120 = arith.addi %c0_i32, %c3_i32 : i32
    %c1_i32 = arith.constant 1 : i32
    scf.for %arg17 = %c0_i32 to %120 step %c1_i32  : i32 {
      %c1_i32_87 = arith.constant 1 : i32
      %121 = arith.muli %arg17, %c1_i32_87 : i32
      %c0_i32_88 = arith.constant 0 : i32
      %122 = arith.addi %c0_i32_88, %121 : i32
      %c128_i32 = arith.constant 128 : i32
      %123 = arith.muli %122, %c128_i32 : i32
      %124 = tpu.assume_multiple %123, 128 : i32
      %c0_89 = arith.constant 0 : index
      %125 = arith.index_cast %124 : i32 to index
      %126 = vector.load %arg16[%c0_89, %125] : memref<4x384xf32, #tpu.memory_space<vmem>>, vector<4x128xf32>
      %127 = arith.truncf %126 : vector<4x128xf32> to vector<4x128xbf16>
      %cst_90 = arith.constant dense<0.000000e+00> : vector<256x128xf32>
      %128 = tpu.matmul %116, %127, %cst_90 {dimension_numbers = #tpu.dot_dimension_numbers<[1], [0], [0], [1], [0, 0, 1, 1], [], []>} : vector<256x4xbf16>, vector<4x128xbf16>, vector<256x128xf32> -> vector<256x128xf32>
      %cst_91 = arith.constant 5.000000e-01 : f32
      %129 = vector.broadcast %cst_91 : f32 to vector<256x128xf32>
      %130 = arith.mulf %128, %129 : vector<256x128xf32>
      %cst_92 = arith.constant dense<0xFF800000> : vector<128xf32>
      %131 = vector.multi_reduction <maximumf>, %130, %cst_92 [0] : vector<256x128xf32> to vector<128xf32>
      %132 = vector.shape_cast %131 : vector<128xf32> to vector<1x128xf32>
      %133 = vector.broadcast %132 : vector<1x128xf32> to vector<256x128xf32>
      %134 = arith.subf %130, %133 : vector<256x128xf32>
      %135 = math.exp %134 : vector<256x128xf32>
      %cst_93 = arith.constant dense<0.000000e+00> : vector<128xf32>
      %136 = vector.multi_reduction <add>, %135, %cst_93 [0] : vector<256x128xf32> to vector<128xf32>
      %137 = vector.shape_cast %136 : vector<128xf32> to vector<1x128xf32>
      %138 = arith.truncf %135 : vector<256x128xf32> to vector<256x128xbf16>
      %cst_94 = arith.constant dense<0.000000e+00> : vector<4x128xf32>
      %139 = tpu.matmul %117, %138, %cst_94 {dimension_numbers = #tpu.dot_dimension_numbers<[1], [0], [0], [1], [0, 0, 1, 1], [], []>} : vector<4x256xbf16>, vector<256x128xbf16>, vector<4x128xf32> -> vector<4x128xf32>
      %140 = tpu.reciprocal %137 {approx = true} : vector<1x128xf32> -> vector<1x128xf32>
      %141 = vector.broadcast %140 : vector<1x128xf32> to vector<4x128xf32>
      %142 = arith.mulf %139, %141 : vector<4x128xf32>
      %143 = arith.truncf %142 : vector<4x128xf32> to vector<4x128xbf16>
      %cst_95 = arith.constant dense<0.000000e+00> : vector<4x128xf32>
      %144 = tpu.matmul %118, %143, %cst_95 {dimension_numbers = #tpu.dot_dimension_numbers<[1], [0], [0], [1], [0, 0, 1, 1], [], []>} : vector<4x4xbf16>, vector<4x128xbf16>, vector<4x128xf32> -> vector<4x128xf32>
      %145 = vector.broadcast %119 : vector<4x1xf32> to vector<4x128xf32>
      %146 = arith.addf %144, %145 : vector<4x128xf32>
      %c0_96 = arith.constant 0 : index
      %c0_97 = arith.constant 0 : index
      %147 = arith.index_cast %124 : i32 to index
      %148 = vector.load %arg15[%c0_96, %c0_97, %147] : memref<1x4x384xf32, #tpu.memory_space<vmem>>, vector<1x4x128xf32>
      %149 = vector.shape_cast %148 : vector<1x4x128xf32> to vector<4x128xf32>
      %150 = vector.broadcast %1 : f32 to vector<4x128xf32>
      %151 = arith.mulf %150, %146 : vector<4x128xf32>
      %152 = arith.addf %149, %151 : vector<4x128xf32>
      %c0_98 = arith.constant 0 : index
      %c0_99 = arith.constant 0 : index
      %153 = arith.index_cast %124 : i32 to index
      %154 = vector.load %arg15[%c0_98, %c0_99, %153] : memref<1x4x384xf32, #tpu.memory_space<vmem>>, vector<1x4x128xf32>
      %155 = vector.shape_cast %154 : vector<1x4x128xf32> to vector<4x128xf32>
      %156 = vector.shape_cast %152 : vector<4x128xf32> to vector<1x4x128xf32>
      tpu.vector_store %arg15[%c0_98, %c0_99, %153], %156 {strides = array<i32>} : memref<1x4x384xf32, #tpu.memory_space<vmem>>, vector<1x4x128xf32>,
    }
    %c3_i32_86 = arith.constant 3 : i32
    return
  }
  func.func @transform_0(%arg0: i32) -> i32 {
    %c0_i32 = arith.constant 0 : i32
    %c0_i32_0 = arith.constant 0 : i32
    return %c0_i32 : i32
  }
  func.func @transform_1(%arg0: i32) -> (i32, i32, i32) {
    %c0_i32 = arith.constant 0 : i32
    %c0_i32_0 = arith.constant 0 : i32
    %c0_i32_1 = arith.constant 0 : i32
    return %arg0, %c0_i32, %c0_i32_0 : i32, i32, i32
  }
  func.func @transform_2(%arg0: i32) -> (i32, i32, i32) {
    %c0_i32 = arith.constant 0 : i32
    %c0_i32_0 = arith.constant 0 : i32
    %c0_i32_1 = arith.constant 0 : i32
    return %arg0, %c0_i32, %c0_i32_0 : i32, i32, i32
  }
  func.func @transform_3(%arg0: i32) -> (i32, i32, i32) {
    %c0_i32 = arith.constant 0 : i32
    %c0_i32_0 = arith.constant 0 : i32
    %c0_i32_1 = arith.constant 0 : i32
    return %arg0, %c0_i32, %c0_i32_0 : i32, i32, i32
  }
  func.func @transform_4(%arg0: i32) -> (i32, i32, i32) {
    %c0_i32 = arith.constant 0 : i32
    %c0_i32_0 = arith.constant 0 : i32
    %c0_i32_1 = arith.constant 0 : i32
    %c0_i32_2 = arith.constant 0 : i32
    return %c0_i32, %c0_i32_0, %c0_i32_1 : i32, i32, i32
  }
  func.func @transform_5(%arg0: i32) -> (i32, i32) {
    %c0_i32 = arith.constant 0 : i32
    %c0_i32_0 = arith.constant 0 : i32
    %c0_i32_1 = arith.constant 0 : i32
    return %c0_i32, %c0_i32_0 : i32, i32
  }
  func.func @transform_6(%arg0: i32) -> (i32, i32) {
    %c0_i32 = arith.constant 0 : i32
    %c0_i32_0 = arith.constant 0 : i32
    %c0_i32_1 = arith.constant 0 : i32
    return %c0_i32, %c0_i32_0 : i32, i32
  }
  func.func @transform_7(%arg0: i32) -> (i32, i32) {
    %c0_i32 = arith.constant 0 : i32
    %c0_i32_0 = arith.constant 0 : i32
    %c0_i32_1 = arith.constant 0 : i32
    return %c0_i32, %c0_i32_0 : i32, i32
  }
  func.func @transform_8(%arg0: i32) -> (i32, i32) {
    %c0_i32 = arith.constant 0 : i32
    %c0_i32_0 = arith.constant 0 : i32
    %c0_i32_1 = arith.constant 0 : i32
    return %c0_i32, %c0_i32_0 : i32, i32
  }
  func.func @transform_9(%arg0: i32) -> (i32, i32) {
    %c0_i32 = arith.constant 0 : i32
    %c0_i32_0 = arith.constant 0 : i32
    %c0_i32_1 = arith.constant 0 : i32
    return %c0_i32, %c0_i32_0 : i32, i32
  }
  func.func @transform_10(%arg0: i32) -> (i32, i32) {
    %c0_i32 = arith.constant 0 : i32
    %c0_i32_0 = arith.constant 0 : i32
    %c0_i32_1 = arith.constant 0 : i32
    return %c0_i32, %c0_i32_0 : i32, i32
  }
  func.func @transform_11(%arg0: i32) -> (i32, i32) {
    %c0_i32 = arith.constant 0 : i32
    %c0_i32_0 = arith.constant 0 : i32
    %c0_i32_1 = arith.constant 0 : i32
    return %c0_i32, %c0_i32_0 : i32, i32
  }
  func.func @transform_12(%arg0: i32) -> (i32, i32) {
    %c0_i32 = arith.constant 0 : i32
    %c0_i32_0 = arith.constant 0 : i32
    %c0_i32_1 = arith.constant 0 : i32
    return %c0_i32, %c0_i32_0 : i32, i32
  }
  func.func @transform_13(%arg0: i32) -> (i32, i32) {
    %c0_i32 = arith.constant 0 : i32
    %c0_i32_0 = arith.constant 0 : i32
    %c0_i32_1 = arith.constant 0 : i32
    return %c0_i32, %c0_i32_0 : i32, i32
  }
  func.func @transform_14(%arg0: i32) -> (i32, i32, i32) {
    %c0_i32 = arith.constant 0 : i32
    %c0_i32_0 = arith.constant 0 : i32
    %c0_i32_1 = arith.constant 0 : i32
    return %arg0, %c0_i32, %c0_i32_0 : i32, i32, i32
  }
}

</mosaic_0001>

<bundles_post_ra>
// kernel: tpu_custom_call.1
= control target key start
LH: loop header
LB: loop body
LE: loop exit
PB: predicated region body
PF: predicated region fallthrough
CT: control target
= control target key end

     0   :  { %s4699_s0 = inlined_call_operand.vmem [shape: f32[3], index: 0, kind: input, shape index: {}]   ;;  %s4700_s1 = inlined_call_operand.vmem [shape: f32[2,4,422], index: 1, kind: input, shape index: {}]   ;;  %s4701_s2 = inlined_call_operand.vmem [shape: bf16[2,256,4], index: 2, kind: input, shape index: {}]   ;;  %s4702_s3 = inlined_call_operand.vmem [shape: bf16[2,4,256], index: 3, kind: input, shape index: {}]   ;;  %s4703_s4 = inlined_call_operand.vmem [shape: bf16[9,4,4], index: 4, kind: input, shape index: {}]   ;;  %s4704_s5 = inlined_call_operand.vmem [shape: f32[4,1], index: 5, kind: input, shape index: {}]   ;;  %s4705_s6 = inlined_call_operand.vmem [shape: bf16[4,4], index: 6, kind: input, shape index: {}]   ;;  %s4706_s7 = inlined_call_operand.vmem [shape: f32[4,1], index: 7, kind: input, shape index: {}]   ;;  %s4707_s8 = inlined_call_operand.vmem [shape: bf16[4,4], index: 8, kind: input, shape index: {}]   ;;  %s4708_s9 = inlined_call_operand.vmem [shape: f32[1,4], index: 9, kind: input, shape index: {}]   ;;  %s4709_s10 = inlined_call_operand.vmem [shape: bf16[4,4], index: 10, kind: input, shape index: {}]   ;;  %s4710_s11 = inlined_call_operand.vmem [shape: f32[4,1], index: 11, kind: input, shape index: {}]   ;;  %s4711_s12 = inlined_call_operand.vmem [shape: bf16[4,4], index: 12, kind: input, shape index: {}]   ;;  %s4712_s13 = inlined_call_operand.vmem [shape: f32[4,1], index: 13, kind: input, shape index: {}]   ;;  %s4713_s14 = inlined_call_operand.hbm [shape: f32[2,4,384], index: 14, kind: output, shape index: {}]  }
   0x1   :  { %4747 = sst [smem:[#allocation35_spill]] %s4699_s0 }
   0x2   :  { %4748 = sst [smem:[#allocation36_spill]] %s4700_s1 }
   0x3   :  { %4749 = sst [smem:[#allocation37_spill]] %s4701_s2 }
   0x4   :  { %19 = vsyncpa [#allocation5], 0 }
   0x5   :  { %20 = vsyncpa [#allocation4], 0 }
   0x6   :  { %22 = vsyncpa [#allocation4 + $0x1], 0  ;;  %s3651_s29 = smov 0   ;;  %s3653_s30 = smov 0  }
   0x7   :  { %s3655_s15 = smov 0   ;;  %s3657_s16 = smov 0  }
   0x8 LB: > { %4750 = sst [smem:[#allocation9_spill]] %s3550_s15  ;;  %s3672_s17 = sadd.s32 4294967295, %s3554_s16   ;;  %s3554_s16 = sphi %s3657_s16, %s4832_s16   ;;  %s3550_s15 = sphi %s3655_s15, %s4834_s15   ;;  %s3546_s30 = sphi %s3653_s30, %s4836_s30   ;;  %s3542_s29 = sphi %s3651_s29, %s4835_s29  }
   0x9   : > { %s2977_s18 = sadd.s32 4294967294, %s3554_s16   ;;  %s3676_s19 = sadd.s32 1, %s3554_s16  }
   0xa   : > { %4751 = sst [smem:[#allocation10_spill]] %s3676_s19  ;;  %s344_s20 = sadd.s32 1, %s3550_s15 }
   0xb   : > { %s341_s21 = ssub.s32 %s3554_s16, %s3676_s19  ;;  %p354_p0 = scmp.ne.s32.totalorder %s3550_s15, %s3546_s30 }
   0xc   : > { %p342_p1 = scmp.eq.s32.totalorder %s341_s21, 0  ;;  %p355_p2 = scmp.eq.s32.totalorder %s3672_s17, 1 }
   0xd   : > { %p360_p3 = scmp.ne.s32.totalorder %s3546_s30, %s3542_s29  ;;  %p361_p4 = scmp.eq.s32.totalorder %s2977_s18, 1 }
   0xe   : > { %s3687_s22 = scalar_select %p342_p1, %s3550_s15, %s344_s20  }
   0xf   : > { %p3689_p5 = por %p355_p2, %p354_p0  ;;  %p3693_p6 = por %p361_p4, %p360_p3 }
  0x10   : > { %4752 = sst [smem:[#allocation11_spill]] %s3687_s22  ;;  %p2978_p7 = scmp.ge.s32.totalorder %s3554_s16, 1 }
  0x11   : > { %p368_p8 = scmp.lt.s32.totalorder %s3554_s16, 3  ;;  %p3324_p9 = scmp.eq.s32.totalorder %s3672_s17, 0 }
  0x12   : > { %s4756_s0 = sld [smem:[#allocation35_spill]] }
  0x13   : > { %p3700_p10 = pnand %p2978_p7, %p368_p8 }
  0x15   : > { %p3316_p11 = pneg %p3700_p10 }
  0x17   : > { %p3317_p12 = pnand %p3324_p9, %p3316_p11 }
  0x18   : > { %s381_s28 = sshll.u32 %s4756_s0, 4  ;;  %s382_s28 = int_to_ptr.vmem [resolvable:$true] %s381_s28 }
  0x19   : > { %s3469_s18 = scalar_lea.vmem %s382_s28, 16  ;;  %p3471_p0 = pneg %p3317_p12 }
  0x1a   : > { %p3470_p13 = scmp.ne.s32.totalorder %s382_s28, %s3469_s18  ;;  %p3477_p3 = scmp.lt.s32.totalorder %s382_s28, %s382_s28 }
  0x1b   : > { %p3478_p4 = scmp.lt.s32.totalorder %s3469_s18, %s3469_s18 }
  0x1c   : > { %p3472_p1 = pnand %p3471_p0, %p3470_p13 }
  0x1d   : > { %p3479_p7 = por %p3478_p4, %p3477_p3 }
  0x1e   : > { %p3473_p2 = pneg %p3472_p1 }
  0x20   : > { %p3480_p8 = pnand %p3479_p7, %p3473_p2 }
  0x22   : > { %3483 = shalt.err (!%p3480_p8)
}
  0x23   : > { %s3560_s20 = smov [#allocation3]   ;;  %448 = sbr.rel (%p3700_p10) target bundleno = 1336 (0x538), region = 76 }
  0x24   : > { %3319 = dma.vmem_to_smem (!%p3317_p12), %s382_s28, 16, %s3560_s20, [#allocation5]  }
  0x2a   : > { %3533 = dma.done.wait (%p3324_p9), [#allocation5], 16  }
  0x2b   : > { %3535 = vsyncadd (%p3324_p9), [#allocation5], 4294967280 }
  0x2c   : > { %454 = sfence }
  0x2d   : > { %p505_p11 = scmp.lt.s32.totalorder %s3672_s17, 1  ;;  %v3561_v0 = vmov 0.0   ;;  %v3562_v1 = vmov 0   ;;  %vm3563_vm0 = vmmov 0   ;;  %s4757_s1 = sld [smem:[#allocation36_spill]]  ;;  %vm545_vm1 = vcmask 1039360  }
  0x2e   : > { %3169 = vmatprep.subr.bf16.mxu1 %v3561_v0  ;;  %620 = vmatprep.mubr.bf16.mxu0 %v3562_v1  ;;  %s4758_s2 = sld [smem:[#allocation37_spill]]  ;;  %s3564_s0 = smov 127   ;;  %v1742_v10 = vld [vmem:[%s4704_s5] sm:$0xf]  ;;  %vm578_vm2 = vcmask 1041408   ;;  %vm574_vm3 = vcmask 31744  }
  0x2f   : > { %s3720_s21 = scalar_select %p505_p11, %s3672_s17, 1  ;;  %3171 = vmatprep.mubr.msk.bf16.mxu1 %vm3563_vm0, %v3561_v0  ;;  %3382 = vset.pattern.permute.xlu0 %v3562_v1  ;;  %v2133_v11 = vld [vmem:[%s4710_s11] sm:$0xf]  ;;  %vm773_vm4 = vcmask 1031168   ;;  %vm913_vm5 = vcmask 900096   ;;  %vm1053_vm6 = vcmask 891904  }
  0x30   : > { %3383 = vset.pattern.permute.xlu1 %v3562_v1  ;;  %s4718_s27 = smov 109   ;;  %s3568_s28 = smov 108   ;;  %v2199_v12 = vld [vmem:[%s4706_s7] sm:$0xf]  ;;  %v2998_v48 = vld [vmem:[%s4703_s4 + $0x4] sm:$0x3] }
  0x31   : > { %s3088_s26 = sshll.u32 %s3720_s21, 4  ;;  %s3089_s25 = sshll.u32 %s3720_s21, 7  ;;  %v2991_v28 = vld [vmem:[%s4703_s4 + $0x2] sm:$0x3]  ;;  %v528_v38 = vld [vmem:[%s4703_s4] sm:$0x3] }
  0x32   : > { %s3569_s20 = smov 92   ;;  %vm1193_vm7 = vcmask 883712   ;;  %v3002_v58 = vld [vmem:[%s4703_s4 + $0x6] sm:$0x3]  ;;  %vm1333_vm8 = vcmask 752640   ;;  %vm1473_vm9 = vcmask 744448  }
  0x33   : > { %s3730_s18 = scalar_lea.vmem %s4757_s1, %s3088_s26  ;;  %s4714_s26 = smov 126   ;;  %vm1613_vm10 = vcmask 736256   ;;  %vm543_vm11 = vcmask 1043456  }
  0x34   : > { %s3737_s22 = scalar_lea.vmem %s4758_s2, %s3089_s25  ;;  %v3740_v2 = vld [vmem:[%s3730_s18 + $0x8] sm:$0xff]  ;;  %v3743_v3 = vld [vmem:[%s3730_s18] sm:$0xff]  ;;  %s4716_s25 = smov 110  }
  0x35   : > { %v556_v4 = vpack.c.bf16 %v3740_v2, %v3740_v2  ;;  %v3749_v5 = vpack.c.bf16 %v3743_v3, %v3743_v3  ;;  %v554_v6 = vcombine.high %v3740_v2, %v3740_v2  ;;  %v530_v7 = vcombine.high %v3743_v3, %v3743_v3  ;;  %s4760_s1 = smov 110   ;;  %s4761_s2 = smov 109   ;;  %v3823_v15 = vld [vmem:[%s3730_s18 + $0x8] sm:$0xf] }
  0x36   : > { %v534_v20 = vpack.c.bf16 %v3823_v15, %v3823_v15 }
  0x37   : > { %566 = vrot.lane.b32.xlu1 %v556_v4, %s3564_s0  ;;  %562 = vrot.lane.b32.xlu0 %v3749_v5, %s3564_s0  ;;  %v557_v8 = vpack.c.bf16 %v554_v6, %v554_v6  ;;  %v3758_v9 = vpack.c.bf16 %v530_v7, %v530_v7  ;;  %v673_v30 = vsel %vm578_vm2, %v3749_v5, 0  ;;  %v3006_v7 = vld [vmem:[%s4703_s4 + $0x8] sm:$0x3] }
  0x38   : > { %v679_v32 = vsel %vm578_vm2, %v534_v20, 0 }
  0x3b   : > { %568 = vrot.lane.b32.xlu1 %v557_v8, %s3564_s0  ;;  %564 = vrot.lane.b32.xlu0 %v3758_v9, %s3564_s0 }
  0x3f   : > { %794 = vrot.lane.b32.xlu0 %v3749_v5, %s4714_s26  ;;  %796 = vrot.lane.b32.xlu1 %v3758_v9, %s4714_s26 }
  0x43   : > { %798 = vrot.lane.b32.xlu0 %v556_v4, %s4714_s26  ;;  %934 = vrot.lane.b32.xlu1 %v3749_v5, %s4716_s25 }
  0x47   : > { %936 = vrot.lane.b32.xlu0 %v3758_v9, %s4716_s25  ;;  %938 = vrot.lane.b32.xlu1 %v556_v4, %s4716_s25 }
  0x4b   : > { %800 = vrot.lane.b32.xlu0 %v557_v8, %s4714_s26  ;;  %1074 = vrot.lane.b32.xlu1 %v3749_v5, %s4718_s27  ;;  %s3570_s26 = smov 91  }
  0x4f   : > { %1076 = vrot.lane.b32.xlu0 %v3758_v9, %s4718_s27  ;;  %1078 = vrot.lane.b32.xlu1 %v556_v4, %s4718_s27 }
  0x53   : > { %940 = vrot.lane.b32.xlu0 %v557_v8, %s4716_s25  ;;  %1214 = vrot.lane.b32.xlu1 %v3749_v5, %s3568_s28  ;;  %s3571_s25 = smov 90  }
  0x57   : > { %1216 = vrot.lane.b32.xlu0 %v3758_v9, %s3568_s28  ;;  %1218 = vrot.lane.b32.xlu1 %v556_v4, %s3568_s28 }
  0x5b   : > { %1080 = vrot.lane.b32.xlu0 %v557_v8, %s4718_s27  ;;  %1354 = vrot.lane.b32.xlu1 %v3749_v5, %s3569_s20  ;;  %s4759_s27 = smov 126  }
  0x5f   : > { %1356 = vrot.lane.b32.xlu0 %v3758_v9, %s3569_s20  ;;  %1358 = vrot.lane.b32.xlu1 %v556_v4, %s3569_s20 }
  0x63   : > { %1220 = vrot.lane.b32.xlu0 %v557_v8, %s3568_s28  ;;  %1494 = vrot.lane.b32.xlu1 %v3749_v5, %s3570_s26 }
  0x67   : > { %1496 = vrot.lane.b32.xlu0 %v3758_v9, %s3570_s26  ;;  %1498 = vrot.lane.b32.xlu1 %v556_v4, %s3570_s26 }
  0x6b   : > { %1360 = vrot.lane.b32.xlu0 %v557_v8, %s3569_s20  ;;  %1634 = vrot.lane.b32.xlu1 %v3749_v5, %s3571_s25 }
  0x6f   : > { %1636 = vrot.lane.b32.xlu0 %v3758_v9, %s3571_s25  ;;  %1638 = vrot.lane.b32.xlu1 %v556_v4, %s3571_s25 }
  0x73   : > { %1500 = vrot.lane.b32.xlu0 %v557_v8, %s3570_s26  ;;  %1640 = vrot.lane.b32.xlu1 %v557_v8, %s3571_s25 }
  0x77   : > { %539 = vrot.lane.b32.xlu1 %v3740_v2, %s3564_s0  ;;  %537 = vrot.lane.b32.xlu0 %v3743_v3, %s3564_s0 }
  0x7b   : > { %768 = vrot.lane.b32.xlu1 %v3740_v2, %s4759_s27  ;;  %766 = vrot.lane.b32.xlu0 %v3743_v3, %s4759_s27 }
  0x7f   : > { %908 = vrot.lane.b32.xlu1 %v3740_v2, %s4760_s1  ;;  %906 = vrot.lane.b32.xlu0 %v3743_v3, %s4760_s1 }
  0x83   : > { %1048 = vrot.lane.b32.xlu1 %v3740_v2, %s4761_s2  ;;  %1046 = vrot.lane.b32.xlu0 %v3743_v3, %s4761_s2 }
  0x87   : > { %1188 = vrot.lane.b32.xlu1 %v3740_v2, %s3568_s28  ;;  %1186 = vrot.lane.b32.xlu0 %v3743_v3, %s3568_s28  ;;  %s2989_s28 = sld [smem:[#allocation3 + $0x1]] }
  0x8b   : > { %1328 = vrot.lane.b32.xlu1 %v3740_v2, %s3569_s20  ;;  %1326 = vrot.lane.b32.xlu0 %v3743_v3, %s3569_s20 }
  0x8d   : > { %v3825_v16 = vstv %s2989_s28  ;;  %s521_s28 = sld [smem:[#allocation3]] }
  0x8e   : > { %v1770_v17 = vmul.f32 %v3825_v16, %v3743_v3  ;;  %v1771_v25 = vmul.f32 %v3825_v16, %v3740_v2 }
  0x8f   : > { %1468 = vrot.lane.b32.xlu1 %v3740_v2, %s3570_s26  ;;  %1466 = vrot.lane.b32.xlu0 %v3743_v3, %s3570_s26  ;;  %s4282_s26 = smov 0  }
  0x90   : > { %v1774_v21 = vcombine.high %v1770_v17, %v1770_v17  ;;  %v1775_v33 = vcombine.high %v1771_v25, %v1771_v25 }
  0x93   : > { %1606 = vrot.lane.b32.xlu1 %v3743_v3, %s3571_s25  ;;  %1745 = vperm.xlu0 %3382, %v1742_v10  }
  0x97   : > { %1608 = vrot.lane.b32.xlu1 %v3740_v2, %s3571_s25  ;;  %2202 = vperm.xlu0 %3382, %v2199_v12   ;;  %s3090_s25 = sshll.u32 %s3720_s21, 2 }
  0x98   : > { %s519_s20 = scalar_lea.vmem %s4702_s3, %s3090_s25 }
  0x9b   : > { %2136 = vperm.xlu1 %3383, %v2133_v11   ;;  %1776 = vrot.lane.b32.xlu0 %v1770_v17, %s4761_s2 }
  0x9f   : > { %1778 = vrot.lane.b32.xlu1 %v1774_v21, %s4761_s2  ;;  %1780 = vrot.lane.b32.xlu0 %v1771_v25, %s4761_s2 }
  0xa3   : > { %1782 = vrot.lane.b32.xlu1 %v1775_v33, %s4761_s2 }
  0xa9   : > { %v567_v13 = vpop.permute.xlu1 %566  ;;  %v563_v14 = vpop.permute.xlu0 %562 }
  0xad   : > { %v569_v18 = vpop.permute.xlu1 %568  ;;  %v565_v19 = vpop.permute.xlu0 %564 }
  0xae   : > { %v572_v22 = vsel %vm545_vm1, %v565_v19, %v567_v13  ;;  %v571_v23 = vsel %vm545_vm1, %v563_v14, %v565_v19  ;;  %v573_v24 = vsel %vm545_vm1, %v567_v13, %v569_v18  ;;  %v3010_v19 = vld [vmem:[%s4703_s4 + $0xa] sm:$0x3] }
  0xaf   : > { %2992 = vmatprep.subr.msk.bf16.mxu0 %vm578_vm2, %v572_v22  ;;  %v580_v26 = vsel %vm578_vm2, %v571_v23, 0  ;;  %v586_v27 = vsel %vm578_vm2, %v573_v24, 0 }
  0xb0   : > { %589 = vmatpush1.bf16.msra.mxu0 %v580_v26  ;;  %3170 = vmatpush3.bf16.msra.mxu1 %v586_v27 }
  0xb1   : > { %v795_v29 = vpop.permute.xlu0 %794  ;;  %2995 = vmatprep.subr.msk.bf16.mxu0 %vm578_vm2, %v3758_v9  ;;  %v797_v31 = vpop.permute.xlu1 %796  ;;  %3175 = vmatprep.subr.bf16.mxu1 %v3561_v0 }
  0xb2   : > { %v803_v36 = vsel %vm773_vm4, %v795_v29, %v797_v31  ;;  %v3014_v29 = vld [vmem:[%s4703_s4 + $0xc] sm:$0x3] }
  0xb3   : > { %2993 = vmatmul.mubr.msk.bf16.vlgmr.msra.gmra.mrb[0].mxu0 %vm574_vm3, %v2991_v28  ;;  %3172 = vmatmul.mubr.msk.bf16.vlgmr.msra.gmra.mrb[0].mxu1 %vm574_vm3, %v2991_v28  ;;  %v810_v39 = vsel %vm578_vm2, %v803_v36, 0 }
  0xb4   : > { %682 = vmatpush1.bf16.msra.mxu0 %v673_v30  ;;  %3176 = vmatpush3.bf16.msra.mxu1 %v679_v32 }
  0xb5   : > { %v799_v34 = vpop.permute.xlu0 %798  ;;  %v935_v35 = vpop.permute.xlu1 %934  ;;  %713 = vmatprep.mubr.bf16.mxu0 %v3562_v1  ;;  %3177 = vmatprep.mubr.msk.bf16.mxu1 %vm3563_vm0, %v3561_v0 }
  0xb6   : > { %v804_v37 = vsel %vm773_vm4, %v797_v31, %v799_v34  ;;  %3181 = vmatprep.subr.bf16.mxu1 %v3561_v0 }
  0xb7   : > { %2999 = vmatprep.subr.msk.bf16.mxu0 %vm578_vm2, %v804_v37 }
  0xb9   : > { %v937_v40 = vpop.permute.xlu0 %936  ;;  %v939_v41 = vpop.permute.xlu1 %938 }
  0xba   : > { %v944_v42 = vsel %vm913_vm5, %v937_v40, %v939_v41  ;;  %v943_v45 = vsel %vm913_vm5, %v935_v35, %v937_v40  ;;  %v3018_v40 = vld [vmem:[%s4703_s4 + $0xe] sm:$0x3] }
  0xbb   : > { %2996 = vmatmul.mubr.msk.bf16.vlgmr.msra.gmra.mrb[4].mxu0 %vm574_vm3, %v528_v38  ;;  %3178 = vmatmul.mubr.msk.bf16.vlgmr.msra.gmra.mrb[4].mxu1 %vm574_vm3, %v528_v38  ;;  %v950_v49 = vsel %vm578_vm2, %v943_v45, 0  ;;  %v3022_v45 = vld [vmem:[%s4703_s4 + $0x10] sm:$0x3] }
  0xbc   : > { %819 = vmatpush1.bf16.msra.mxu0 %v810_v39  ;;  %850 = vmatprep.mubr.bf16.mxu0 %v3562_v1 }
  0xbd   : > { %v801_v43 = vpop.permute.xlu0 %800  ;;  %v1075_v44 = vpop.permute.xlu1 %1074  ;;  %3183 = vmatprep.mubr.msk.bf16.mxu1 %vm3563_vm0, %v3561_v0  ;;  %3003 = vmatprep.subr.msk.bf16.mxu0 %vm578_vm2, %v944_v42 }
  0xbe   : > { %v805_v46 = vsel %vm773_vm4, %v799_v34, %v801_v43  ;;  %v1831_v43 = vld [vmem:[%s4707_s8] sm:$0x3] }
  0xbf   : > { %v816_v47 = vsel %vm578_vm2, %v805_v46, 0  ;;  %v1968_v46 = vsel %vm578_vm2, %v1831_v43, 0 }
  0xc0   : > { %3182 = vmatpush3.bf16.msra.mxu1 %v816_v47  ;;  %v3386_v47 = vld [vmem:[%s3737_s22] sm:$0xff]  }
  0xc1   : > { %v1077_v50 = vpop.permute.xlu0 %1076  ;;  %v1079_v51 = vpop.permute.xlu1 %1078  ;;  %3187 = vmatprep.subr.bf16.mxu1 %v3561_v0 }
  0xc2   : > { %v3881_v52 = vsel %vm1053_vm6, %v1077_v50, %v1079_v51  ;;  %v1083_v55 = vsel %vm1053_vm6, %v1075_v44, %v1077_v50  ;;  %v3059_v44 = vld.sshfl [vmem:[%s519_s20] sm:$0x33 pattern:$0x76325410]  ;;  %v3388_v50 = vld [vmem:[%s3737_s22 + $0x8] sm:$0xff]   ;;  %s502_s20 = sand.u32 1, %s3546_s30  }
  0xc3   : > { %3000 = vmatmul.mubr.msk.bf16.vlgmr.msra.gmra.mrb[8].mxu0 %vm574_vm3, %v2998_v48  ;;  %3184 = vmatmul.mubr.msk.bf16.vlgmr.msra.gmra.mrb[8].mxu1 %vm574_vm3, %v2998_v48  ;;  %v3897_v59 = vsel %vm578_vm2, %v1083_v55, 0  ;;  %v3387_v48 = vld [vmem:[%s3737_s22 + $0x60] sm:$0xff]   ;;  %v3391_v55 = vld [vmem:[%s3737_s22 + $0x70] sm:$0xff]   ;;  %s3308_s21 = smul.u32 12, %s502_s20 }
  0xc4   : > { %959 = vmatpush1.bf16.msra.mxu0 %v950_v49  ;;  %990 = vmatprep.mubr.bf16.mxu0 %v3562_v1  ;;  %v2147_v49 = vcombine.high %v3059_v44, %v3059_v44 }
  0xc5   : > { %v941_v53 = vpop.permute.xlu0 %940  ;;  %v1215_v54 = vpop.permute.xlu1 %1214  ;;  %3189 = vmatprep.mubr.msk.bf16.mxu1 %vm3563_vm0, %v3561_v0  ;;  %3007 = vmatprep.subr.msk.bf16.mxu0 %vm578_vm2, %v3881_v52  ;;  %s4161_s18 = scalar_lea.vmem [#allocation6], %s3308_s21 }
  0xc6   : > { %v945_v56 = vsel %vm913_vm5, %v939_v41, %v941_v53  ;;  %v3390_v53 = vld [vmem:[%s3737_s22 + $0x10] sm:$0xff]  }
  0xc7   : > { %v956_v57 = vsel %vm578_vm2, %v945_v56, 0  ;;  %v3392_v56 = vld [vmem:[%s3737_s22 + $0x18] sm:$0xff]  }
  0xc8   : > { %3188 = vmatpush3.bf16.msra.mxu1 %v956_v57  ;;  %v3393_v57 = vld [vmem:[%s3737_s22 + $0x78] sm:$0xff]  }
  0xc9   : > { %v1217_v60 = vpop.permute.xlu0 %1216  ;;  %v1219_v61 = vpop.permute.xlu1 %1218  ;;  %3193 = vmatprep.subr.bf16.mxu1 %v3561_v0 }
  0xca   : > { %v1224_v62 = vsel %vm1193_vm7, %v1217_v60, %v1219_v61  ;;  %v1223_v4 = vsel %vm1193_vm7, %v1215_v54, %v1217_v60  ;;  %v2152_v54 = vsel %vm578_vm2, %v3059_v44, 0  ;;  %v3395_v60 = vld [vmem:[%s3737_s22 + $0x28] sm:$0xff]  }
  0xcb   : > { %3004 = vmatmul.mubr.msk.bf16.vlgmr.msra.gmra.mrb[12].mxu0 %vm574_vm3, %v3002_v58  ;;  %3190 = vmatmul.mubr.msk.bf16.vlgmr.msra.gmra.mrb[12].mxu1 %vm574_vm3, %v3002_v58  ;;  %v1230_v8 = vsel %vm578_vm2, %v1223_v4, 0  ;;  %v3394_v58 = vld [vmem:[%s3737_s22 + $0x20] sm:$0xff]   ;;  %v3401_v4 = vld [vmem:[%s3737_s22 + $0x58] sm:$0xff]  }
  0xcc   : > { %1099 = vmatpush1.bf16.msra.mxu0 %v3897_v59  ;;  %1130 = vmatprep.mubr.bf16.mxu0 %v3562_v1 }
  0xcd   : > { %v1081_v63 = vpop.permute.xlu0 %1080  ;;  %v1355_v2 = vpop.permute.xlu1 %1354  ;;  %3195 = vmatprep.mubr.msk.bf16.mxu1 %vm3563_vm0, %v3561_v0  ;;  %3011 = vmatprep.subr.msk.bf16.mxu0 %vm578_vm2, %v1224_v62  ;;  %v3397_v62 = vld [vmem:[%s3737_s22 + $0x38] sm:$0xff]  }
  0xce   : > { %v1085_v5 = vsel %vm1053_vm6, %v1079_v51, %v1081_v63  ;;  %v3389_v51 = vld [vmem:[%s3737_s22 + $0x68] sm:$0xff]   ;;  %v2198_v63 = vld [vmem:[%s4705_s6] sm:$0x3] }
  0xcf   : > { %v3911_v6 = vsel %vm578_vm2, %v1085_v5, 0 }
  0xd0   : > { %3194 = vmatpush3.bf16.msra.mxu1 %v3911_v6 }
  0xd1   : > { %v1357_v9 = vpop.permute.xlu0 %1356  ;;  %v1359_v10 = vpop.permute.xlu1 %1358  ;;  %3199 = vmatprep.subr.bf16.mxu1 %v3561_v0 }
  0xd2   : > { %v1364_v11 = vsel %vm1333_vm8, %v1357_v9, %v1359_v10  ;;  %v1363_v14 = vsel %vm1333_vm8, %v1355_v2, %v1357_v9  ;;  %v3398_v2 = vld [vmem:[%s3737_s22 + $0x40] sm:$0xff]  }
  0xd3   : > { %3008 = vmatmul.mubr.msk.bf16.vlgmr.msra.gmra.mrb[16].mxu0 %vm574_vm3, %v3006_v7  ;;  %3196 = vmatmul.mubr.msk.bf16.vlgmr.msra.gmra.mrb[16].mxu1 %vm574_vm3, %v3006_v7  ;;  %v1370_v20 = vsel %vm578_vm2, %v1363_v14, 0 }
  0xd4   : > { %1239 = vmatpush1.bf16.msra.mxu0 %v1230_v8  ;;  %1270 = vmatprep.mubr.bf16.mxu0 %v3562_v1 }
  0xd5   : > { %v1221_v12 = vpop.permute.xlu0 %1220  ;;  %v1495_v13 = vpop.permute.xlu1 %1494  ;;  %3201 = vmatprep.mubr.msk.bf16.mxu1 %vm3563_vm0, %v3561_v0  ;;  %3015 = vmatprep.subr.msk.bf16.mxu0 %vm578_vm2, %v1364_v11 }
  0xd6   : > { %v1225_v17 = vsel %vm1193_vm7, %v1219_v61, %v1221_v12  ;;  %v3396_v61 = vld [vmem:[%s3737_s22 + $0x30] sm:$0xff]  }
  0xd7   : > { %v1236_v18 = vsel %vm578_vm2, %v1225_v17, 0 }
  0xd8   : > { %3200 = vmatpush3.bf16.msra.mxu1 %v1236_v18 }
  0xd9   : > { %v1497_v21 = vpop.permute.xlu0 %1496  ;;  %v1499_v22 = vpop.permute.xlu1 %1498  ;;  %3205 = vmatprep.subr.bf16.mxu1 %v3561_v0 }
  0xda   : > { %v1504_v23 = vsel %vm1473_vm9, %v1497_v21, %v1499_v22  ;;  %v1503_v26 = vsel %vm1473_vm9, %v1495_v13, %v1497_v21 }
  0xdb   : > { %3012 = vmatmul.mubr.msk.bf16.vlgmr.msra.gmra.mrb[20].mxu0 %vm574_vm3, %v3010_v19  ;;  %3202 = vmatmul.mubr.msk.bf16.vlgmr.msra.gmra.mrb[20].mxu1 %vm574_vm3, %v3010_v19  ;;  %v1510_v30 = vsel %vm578_vm2, %v1503_v26, 0 }
  0xdc   : > { %1379 = vmatpush1.bf16.msra.mxu0 %v1370_v20  ;;  %1410 = vmatprep.mubr.bf16.mxu0 %v3562_v1 }
  0xdd   : > { %v1361_v24 = vpop.permute.xlu0 %1360  ;;  %v1635_v25 = vpop.permute.xlu1 %1634  ;;  %3207 = vmatprep.mubr.msk.bf16.mxu1 %vm3563_vm0, %v3561_v0  ;;  %3019 = vmatprep.subr.msk.bf16.mxu0 %vm578_vm2, %v1504_v23 }
  0xde   : > { %v1365_v27 = vsel %vm1333_vm8, %v1359_v10, %v1361_v24 }
  0xdf   : > { %v1376_v28 = vsel %vm578_vm2, %v1365_v27, 0 }
  0xe0   : > { %3206 = vmatpush3.bf16.msra.mxu1 %v1376_v28 }
  0xe1   : > { %v1637_v31 = vpop.permute.xlu0 %1636  ;;  %v1639_v32 = vpop.permute.xlu1 %1638  ;;  %3211 = vmatprep.subr.bf16.mxu1 %v3561_v0 }
  0xe2   : > { %v1644_v33 = vsel %vm1613_vm10, %v1637_v31, %v1639_v32  ;;  %v1643_v36 = vsel %vm1613_vm10, %v1635_v25, %v1637_v31 }
  0xe3   : > { %3016 = vmatmul.mubr.msk.bf16.vlgmr.msra.gmra.mrb[24].mxu0 %vm574_vm3, %v3014_v29  ;;  %3208 = vmatmul.mubr.msk.bf16.vlgmr.msra.gmra.mrb[24].mxu1 %vm574_vm3, %v3014_v29  ;;  %v1650_v41 = vsel %vm578_vm2, %v1643_v36, 0 }
  0xe4   : > { %1519 = vmatpush1.bf16.msra.mxu0 %v1510_v30  ;;  %1550 = vmatprep.mubr.bf16.mxu0 %v3562_v1 }
  0xe5   : > { %v1501_v34 = vpop.permute.xlu0 %1500  ;;  %v1641_v35 = vpop.permute.xlu1 %1640  ;;  %3213 = vmatprep.mubr.msk.bf16.mxu1 %vm3563_vm0, %v3561_v0  ;;  %3023 = vmatprep.subr.msk.bf16.mxu0 %vm578_vm2, %v1644_v33 }
  0xe6   : > { %v1505_v37 = vsel %vm1473_vm9, %v1499_v22, %v1501_v34  ;;  %v1645_v38 = vsel %vm1613_vm10, %v1639_v32, %v1641_v35 }
  0xe7   : > { %v1516_v39 = vsel %vm578_vm2, %v1505_v37, 0  ;;  %v1656_v42 = vsel %vm578_vm2, %v1645_v38, 0 }
  0xe8   : > { %3212 = vmatpush3.bf16.msra.mxu1 %v1516_v39 }
  0xe9   : > { %3217 = vmatprep.subr.bf16.mxu1 %v3561_v0  ;;  %v4038_v5 = vpop.permute.xlu1 %539  ;;  %v538_v8 = vpop.permute.xlu0 %537 }
  0xeb   : > { %3020 = vmatmul.mubr.msk.bf16.vlgmr.msra.gmra.mrb[28].mxu0 %vm574_vm3, %v3018_v40  ;;  %3214 = vmatmul.mubr.msk.bf16.vlgmr.msra.gmra.mrb[28].mxu1 %vm574_vm3, %v3018_v40 }
  0xec   : > { %1659 = vmatpush1.bf16.msra.mxu0 %v1650_v41  ;;  %3218 = vmatpush3.bf16.msra.mxu1 %v1656_v42 }
  0xed   : > { %1690 = vmatprep.mubr.bf16.mxu0 %v3562_v1  ;;  %3219 = vmatprep.mubr.msk.bf16.mxu1 %vm3563_vm0, %v3561_v0  ;;  %v4050_v7 = vpop.permute.xlu1 %768  ;;  %v767_v10 = vpop.permute.xlu0 %766 }
  0xee   : > { %3305 = vmatprep.subr.msk.bf16.mxu0 %vm578_vm2, %v1831_v43  ;;  %3306 = vmatprep.subr.msk.bf16.mxu1 %vm578_vm2, %v1831_v43 }
  0xf1   : > { %v4052_v9 = vpop.permute.xlu1 %908  ;;  %v4056_v22 = vpop.permute.xlu0 %906 }
  0xf3   : > { %3024 = vmatmul.mubr.msk.bf16.vlgmr.msra.gmra.mrb[32].mxu0 %vm574_vm3, %v3022_v45  ;;  %3220 = vmatmul.mubr.msk.bf16.vlgmr.msra.gmra.mrb[32].mxu1 %vm574_vm3, %v3022_v45 }
  0xf4   : > { %3224 = vmatpush3.bf16.msra.mxu0 %v1968_v46  ;;  %3304 = vmatpush3.bf16.msra.mxu1 %v1968_v46 }
  0xf5   : > { %3225 = vmatprep.mubr.msk.bf16.mxu0 %vm574_vm3, %v3386_v47  ;;  %3249 = vmatprep.mubr.msk.bf16.mxu1 %vm574_vm3, %v3387_v48  ;;  %v4054_v21 = vpop.permute.xlu1 %1048  ;;  %v4060_v35 = vpop.permute.xlu0 %1046  ;;  %v542_v47 = vrot.slane %v4038_v5, 4  ;;  %v541_v48 = vrot.slane %v538_v8, 4 }
  0xf6   : > { %3060 = vmatprep.subr.msk.bf16.mxu1 %vm578_vm2, %v2147_v49 }
  0xf9   : > { %v4058_v34 = vpop.permute.xlu1 %1188 }
  0xfb   : > { %3226 = vmatmul.mubr.msk.bf16.vlgmr.msra.gmra.mrb[36].mxu0 %vm574_vm3, %v3388_v50  ;;  %3250 = vmatmul.mubr.msk.bf16.vlgmr.msra.gmra.mrb[36].mxu1 %vm574_vm3, %v3389_v51  ;;  %v4065_v50 = vpop.permute.xlu0 %1186 }
  0xfc   : > { %2158 = vmatpush1.bf16.msra.mxu1 %v2152_v54  ;;  %3229 = vmatprep.mubr.msk.bf16.mxu0 %vm574_vm3, %v3390_v53  ;;  %v771_v54 = vrot.slane %v4050_v7, 4 }
  0xfd   : > { %3062 = vmatprep.subr.msk.bf16.mxu1 %vm578_vm2, %v3881_v52  ;;  %3253 = vmatprep.mubr.msk.bf16.mxu1 %vm574_vm3, %v3391_v55  ;;  %v2131_v52 = vld [vmem:[%s4709_s10] sm:$0x3]  ;;  %v4063_v49 = vpop.permute.xlu1 %1328  ;;  %v544_v55 = vsel %vm543_vm11, %v541_v48, %v542_v47 }
 0x103   : > { %3230 = vmatmul.mubr.msk.bf16.gmra.mrb[40].mxu0 %vm574_vm3, %v3392_v56  ;;  %3254 = vmatmul.mubr.msk.bf16.gmra.mrb[40].mxu1 %vm574_vm3, %v3393_v57  ;;  %v770_v56 = vrot.slane %v767_v10, 4 }
 0x104   : > { %3233 = vmatprep.mubr.msk.bf16.mxu0 %vm574_vm3, %v3394_v58  ;;  %2189 = vmatprep.mubr.bf16.mxu1 %v3562_v1 }
 0x10b   : > { %3234 = vmatmul.mubr.msk.bf16.gmra.mrb[44].mxu0 %vm574_vm3, %v3395_v60  ;;  %3061 = vmatmul.mubr.msk.bf16.vlgmr.msra.gmra.mrb[44].mxu1 %vm574_vm3, %v2131_v52 }
 0x10c   : > { %2209 = vmatpush1.bf16.msra.mxu1 %v3897_v59  ;;  %3237 = vmatprep.mubr.msk.bf16.mxu0 %vm574_vm3, %v3396_v61  ;;  %v3400_v59 = vld [vmem:[%s3737_s22 + $0x50] sm:$0xff]  }
 0x10d   : > { %2240 = vmatprep.mubr.bf16.mxu1 %v3562_v1  ;;  %3257 = vmatprep.subr.bf16.mxu1 %v3561_v0  ;;  %v3399_v1 = vld [vmem:[%s3737_s22 + $0x48] sm:$0xff]   ;;  %s4114_s22 = sld [smem:[#allocation3 + $0x2]] }
 0x113   : > { %3238 = vmatmul.mubr.msk.bf16.gmra.mrb[48].mxu0 %vm574_vm3, %v3397_v62  ;;  %3063 = vmatmul.mubr.msk.bf16.vlgmr.msra.gmra.mrb[48].mxu1 %vm574_vm3, %v2198_v63 }
 0x114   : > { %3258 = vmatpush3.bf16.msra.mxu1 %v3911_v6  ;;  %3241 = vmatprep.mubr.msk.bf16.mxu0 %vm574_vm3, %v3398_v2  ;;  %v4043_v6 = vld [vmem:[%s4711_s12] sm:$0x3] }
 0x115   : > { %3259 = vmatprep.mubr.msk.bf16.mxu1 %vm3563_vm0, %v3561_v0  ;;  %v4048_v0 = vld [vmem:[%s4712_s13] sm:$0xf] }
 0x11b   : > { %3242 = vmatmul.mubr.msk.bf16.gmra.mrb[52].mxu0 %vm574_vm3, %v3399_v1  ;;  %3260 = vmatmul.mubr.msk.bf16.vlgmr.msra.gmra.mrb[52].mxu1 %vm574_vm3, %v2198_v63 }
 0x11c   : > { %3245 = vmatprep.mubr.msk.bf16.mxu0 %vm574_vm3, %v3400_v59  ;;  %v546_v59 = vsel %vm545_vm1, %v538_v8, %v544_v55  ;;  %v1051_v8 = vrot.slane %v4054_v21, 4 }
 0x123   : > { %3246 = vmatmul.mubr.msk.bf16.gmra.mrb[56].mxu0 %vm574_vm3, %v3401_v4  ;;  %v911_v4 = vrot.slane %v4052_v9, 4 }
 0x186   : > { %v622_v11 = vpop.f32.mrb[0].mxu0  ;;  %v663_v12 = vpop.f32.mrb[0].mxu1 }
 0x187   : > { %v624_v13 = vpop.f32.mrb[1].mxu0  ;;  %v3173_v14 = vpop.f32.mrb[1].mxu1 }
 0x188   : > { %v626_v17 = vpop.f32.mrb[2].mxu0  ;;  %v666_v18 = vpop.f32.mrb[2].mxu1  ;;  %v550_v14 = vadd.f32 %v546_v59, %v3743_v3  ;;  %v775_v3 = vsel %vm773_vm4, %v4050_v7, %v771_v54 }
 0x189   : > { %v627_v19 = vpop.f32.mrb[3].mxu0  ;;  %v3174_v20 = vpop.f32.mrb[3].mxu1 }
 0x18a   : > { %v4077_v18 = vpop.permute.xlu1 %1468  ;;  %v1327_v19 = vpop.permute.xlu0 %1326 }
 0x18b   : > { %v1330_v48 = vrot.slane %v1327_v19, 4 }
 0x18e   : > { %v715_v23 = vpop.f32.mrb[4].mxu0  ;;  %v756_v24 = vpop.f32.mrb[4].mxu1 }
 0x18f   : > { %v716_v25 = vadd.f32 %v715_v23, %v622_v11  ;;  %v717_v26 = vpop.f32.mrb[5].mxu0  ;;  %v757_v27 = vadd.f32 %v756_v24, %v663_v12  ;;  %v3179_v28 = vpop.f32.mrb[5].mxu1  ;;  %v772_v11 = vsel %vm543_vm11, %v770_v56, %v771_v54  ;;  %v910_v12 = vrot.slane %v4056_v22, 4 }
 0x190   : > { %v718_v29 = vadd.f32 %v717_v26, %v624_v13  ;;  %v719_v30 = vpop.f32.mrb[6].mxu0  ;;  %v759_v31 = vpop.f32.mrb[6].mxu1  ;;  %v547_v13 = vsel %vm545_vm1, %v4038_v5, %v542_v47  ;;  %v774_v17 = vsel %vm773_vm4, %v767_v10, %v772_v11 }
 0x191   : > { %v720_v32 = vpop.f32.mrb[7].mxu0  ;;  %v3180_v33 = vpop.f32.mrb[7].mxu1  ;;  %v912_v24 = vsel %vm543_vm11, %v910_v12, %v911_v4  ;;  %v551_v26 = vadd.f32 %v547_v13, %v3823_v15  ;;  %v778_v31 = vadd.f32 %v774_v17, %v550_v14 }
 0x196   : > { %v852_v36 = vpop.f32.mrb[8].mxu0  ;;  %v893_v37 = vpop.f32.mrb[8].mxu1 }
 0x197   : > { %v899_v38 = vadd.f32 %v852_v36, %v716_v25  ;;  %v901_v39 = vadd.f32 %v893_v37, %v757_v27  ;;  %v854_v40 = vpop.f32.mrb[9].mxu0  ;;  %v3185_v41 = vpop.f32.mrb[9].mxu1  ;;  %v1050_v25 = vrot.slane %v4060_v35, 4  ;;  %v914_v37 = vsel %vm913_vm5, %v4056_v22, %v912_v24 }
 0x198   : > { %v900_v42 = vadd.f32 %v854_v40, %v718_v29  ;;  %v856_v43 = vpop.f32.mrb[10].mxu0  ;;  %v896_v44 = vpop.f32.mrb[10].mxu1  ;;  %v779_v40 = vadd.f32 %v775_v3, %v551_v26  ;;  %v915_v41 = vsel %vm913_vm5, %v4052_v9, %v911_v4  ;;  %v918_v7 = vadd.f32 %v914_v37, %v778_v31 }
 0x199   : > { %v857_v45 = vpop.f32.mrb[11].mxu0  ;;  %v3186_v46 = vpop.f32.mrb[11].mxu1  ;;  %v1052_v15 = vsel %vm543_vm11, %v1050_v25, %v1051_v8  ;;  %v1331_v22 = vrot.slane %v4063_v49, 4  ;;  %v1055_v9 = vsel %vm1053_vm6, %v4054_v21, %v1051_v8 }
 0x19a   : > { %v1607_v43 = vpop.permute.xlu1 %1606  ;;  %v1467_v44 = vpop.permute.xlu0 %1466 }
 0x19e   : > { %v992_v51 = vpop.f32.mrb[12].mxu0  ;;  %v1033_v53 = vpop.f32.mrb[12].mxu1 }
 0x19f   : > { %v1039_v57 = vadd.f32 %v992_v51, %v899_v38  ;;  %v1041_v58 = vadd.f32 %v1033_v53, %v901_v39  ;;  %v994_v60 = vpop.f32.mrb[13].mxu0  ;;  %v3191_v52 = vpop.f32.mrb[13].mxu1  ;;  %v1191_v38 = vrot.slane %v4058_v34, 4  ;;  %v1190_v39 = vrot.slane %v4065_v50, 4 }
 0x1a0   : > { %v1040_v61 = vadd.f32 %v994_v60, %v900_v42  ;;  %v996_v62 = vpop.f32.mrb[14].mxu0  ;;  %v1036_v63 = vpop.f32.mrb[14].mxu1  ;;  %v1054_v42 = vsel %vm1053_vm6, %v4060_v35, %v1052_v15  ;;  %v919_v51 = vadd.f32 %v915_v41, %v779_v40 }
 0x1a1   : > { %v997_v2 = vpop.f32.mrb[15].mxu0  ;;  %v3192_v1 = vpop.f32.mrb[15].mxu1  ;;  %v1192_v47 = vsel %vm543_vm11, %v1190_v39, %v1191_v38  ;;  %v1058_v35 = vadd.f32 %v1054_v42, %v918_v7  ;;  %v1471_v63 = vrot.slane %v4077_v18, 4  ;;  %v1195_v11 = vsel %vm1193_vm7, %v4058_v34, %v1191_v38 }
 0x1a2   : > { %v1194_v62 = vsel %vm1193_vm7, %v4065_v50, %v1192_v47  ;;  %v1332_v2 = vsel %vm543_vm11, %v1330_v48, %v1331_v22  ;;  %v1470_v1 = vrot.slane %v1467_v44, 4  ;;  %v1059_v59 = vadd.f32 %v1055_v9, %v919_v51  ;;  %v1609_v4 = vpop.permute.xlu1 %1608  ;;  %v4105_v13 = vpop.permute.xlu0 %1745 }
 0x1a3   : > { %v1198_v21 = vadd.f32 %v1194_v62, %v1058_v35  ;;  %v1334_v12 = vsel %vm1333_vm8, %v1327_v19, %v1332_v2 }
 0x1a4   : > { %v1472_v50 = vsel %vm543_vm11, %v1470_v1, %v1471_v63  ;;  %v1199_v8 = vadd.f32 %v1195_v11, %v1059_v59 }
 0x1a6   : > { %v1132_v20 = vpop.f32.mrb[16].mxu0  ;;  %v1173_v23 = vpop.f32.mrb[16].mxu1 }
 0x1a7   : > { %v1179_v27 = vadd.f32 %v1132_v20, %v1039_v57  ;;  %v1181_v28 = vadd.f32 %v1173_v23, %v1041_v58  ;;  %v1134_v5 = vpop.f32.mrb[17].mxu0  ;;  %v3197_v29 = vpop.f32.mrb[17].mxu1  ;;  %v1610_v20 = vrot.slane %v1607_v43, 4  ;;  %v1611_v23 = vrot.slane %v1609_v4, 4 }
 0x1a8   : > { %v1180_v10 = vadd.f32 %v1134_v5, %v1040_v61  ;;  %v1136_v30 = vpop.f32.mrb[18].mxu0  ;;  %v1176_v32 = vpop.f32.mrb[18].mxu1  ;;  %v1338_v29 = vadd.f32 %v1334_v12, %v1198_v21  ;;  %v1754_v12 = vstv %s521_s28 }
 0x1a9   : > { %v1137_v33 = vpop.f32.mrb[19].mxu0  ;;  %v3198_v36 = vpop.f32.mrb[19].mxu1  ;;  %v1474_v30 = vsel %vm1473_vm9, %v1467_v44, %v1472_v50  ;;  %v1612_v31 = vsel %vm543_vm11, %v1610_v20, %v1611_v23 }
 0x1aa   : > { %v1475_v33 = vsel %vm1473_vm9, %v4077_v18, %v1471_v63  ;;  %v1478_v36 = vadd.f32 %v1474_v30, %v1338_v29  ;;  %v1614_v37 = vsel %vm1613_vm10, %v1607_v43, %v1612_v31  ;;  %v4119_v38 = vpop.permute.xlu0 %2202  ;;  %v1615_v18 = vsel %vm1613_vm10, %v1609_v4, %v1611_v23 }
 0x1ac   : > { %v1618_v47 = vadd.f32 %v1614_v37, %v1478_v36 }
 0x1ae   : > { %v1272_v45 = vpop.f32.mrb[20].mxu0  ;;  %v1313_v46 = vpop.f32.mrb[20].mxu1 }
 0x1af   : > { %v1319_v53 = vadd.f32 %v1272_v45, %v1179_v27  ;;  %v1321_v54 = vadd.f32 %v1313_v46, %v1181_v28  ;;  %v1274_v55 = vpop.f32.mrb[21].mxu0  ;;  %v3203_v56 = vpop.f32.mrb[21].mxu1  ;;  %v1335_v28 = vsel %vm1333_vm8, %v4063_v49, %v1331_v22 }
 0x1b0   : > { %v1320_v57 = vadd.f32 %v1274_v55, %v1180_v10  ;;  %v1276_v58 = vpop.f32.mrb[22].mxu0  ;;  %v1316_v60 = vpop.f32.mrb[22].mxu1  ;;  %v1339_v32 = vadd.f32 %v1335_v28, %v1199_v8  ;;  %v4132_v28 = vld [vmem:[%s4708_s9] ss:$0 sm:$0xff] }
 0x1b1   : > { %v1277_v52 = vpop.f32.mrb[23].mxu0  ;;  %v3204_v61 = vpop.f32.mrb[23].mxu1 }
 0x1b2   : > { %v4117_v49 = vpop.permute.xlu1 %2136  ;;  %v1479_v40 = vadd.f32 %v1475_v33, %v1339_v32  ;;  %v1777_v56 = vpop.permute.xlu0 %1776 }
 0x1b4   : > { %v1619_v51 = vadd.f32 %v1615_v18, %v1479_v40 }
 0x1b6   : > { %v1412_v14 = vpop.f32.mrb[24].mxu0  ;;  %v1453_v17 = vpop.f32.mrb[24].mxu1  ;;  %v1759_v58 = vmul.f32 0.11111111, %v1619_v51 }
 0x1b7   : > { %v1459_v24 = vadd.f32 %v1412_v14, %v1319_v53  ;;  %v1461_v25 = vadd.f32 %v1453_v17, %v1321_v54  ;;  %v1414_v26 = vpop.f32.mrb[25].mxu0  ;;  %v3209_v27 = vpop.f32.mrb[25].mxu1  ;;  %v1758_v53 = vmul.f32 0.11111111, %v1618_v47  ;;  %v1760_v54 = vstv %s4114_s22 }
 0x1b8   : > { %v1460_v34 = vadd.f32 %v1414_v26, %v1320_v57  ;;  %v1416_v5 = vpop.f32.mrb[26].mxu0  ;;  %v1456_v19 = vpop.f32.mrb[26].mxu1  ;;  %v1762_v17 = vmul.f32 %v1760_v54, %v1759_v58 }
 0x1b9   : > { %v1417_v3 = vpop.f32.mrb[27].mxu0  ;;  %v3210_v10 = vpop.f32.mrb[27].mxu1  ;;  %v1761_v2 = vmul.f32 %v1760_v54, %v1758_v53 }
 0x1ba   : > { %v1779_v55 = vpop.permute.xlu1 %1778  ;;  %v1781_v8 = vpop.permute.xlu0 %1780 }
 0x1bb   : > { %v1784_v5 = vsel %vm1053_vm6, %v1777_v56, %v1779_v55  ;;  %v1785_v31 = vsel %vm1053_vm6, %v1779_v55, %v1781_v8 }
 0x1be   : > { %v1552_v15 = vpop.f32.mrb[28].mxu0  ;;  %v1593_v39 = vpop.f32.mrb[28].mxu1 }
 0x1bf   : > { %v1599_v41 = vadd.f32 %v1552_v15, %v1459_v24  ;;  %v1601_v7 = vadd.f32 %v1593_v39, %v1461_v25  ;;  %v1554_v42 = vpop.f32.mrb[29].mxu0  ;;  %v3215_v44 = vpop.f32.mrb[29].mxu1  ;;  %v1764_v25 = vcombine.high %v1761_v2, %v1761_v2 }
 0x1c0   : > { %v1600_v45 = vadd.f32 %v1554_v42, %v1460_v34  ;;  %v1556_v46 = vpop.f32.mrb[30].mxu0  ;;  %v1596_v22 = vpop.f32.mrb[30].mxu1 }
 0x1c1   : > { %v1557_v48 = vpop.f32.mrb[31].mxu0  ;;  %v3216_v43 = vpop.f32.mrb[31].mxu1 }
 0x1c2   : > { %v1783_v23 = vpop.permute.xlu1 %1782 }
 0x1c3   : > { %v1786_v29 = vsel %vm1053_vm6, %v1781_v8, %v1783_v23 }
 0x1c6   : > { %v1692_v9 = vpop.f32.mrb[32].mxu0  ;;  %v1733_v57 = vpop.f32.mrb[32].mxu1 }
 0x1c7   : > { %v1739_v35 = vadd.f32 %v1692_v9, %v1599_v41  ;;  %v1741_v60 = vadd.f32 %v1733_v57, %v1601_v7  ;;  %v1694_v52 = vpop.f32.mrb[33].mxu0  ;;  %v3221_v61 = vpop.f32.mrb[33].mxu1 }
 0x1c8   : > { %v1740_v62 = vadd.f32 %v1694_v52, %v1600_v45  ;;  %v1696_v63 = vpop.f32.mrb[34].mxu0  ;;  %v1736_v1 = vpop.f32.mrb[34].mxu1 }
 0x1c9   : > { %v1748_v59 = vadd.f32 %v4105_v13, %v1739_v35  ;;  %v1750_v4 = vadd.f32 %v4105_v13, %v1741_v60  ;;  %v1697_v11 = vpop.f32.mrb[35].mxu0  ;;  %v3222_v21 = vpop.f32.mrb[35].mxu1 }
 0x1ca   : > { %v1749_v14 = vadd.f32 %v4105_v13, %v1740_v62 }
 0x1cb   : > { %v1751_v20 = vmax.f32 %v1748_v59, 0.0  ;;  %v1753_v50 = vmax.f32 %v1750_v4, 0.0 }
 0x1cc   : > { %v1752_v24 = vmax.f32 %v1749_v14, 0.0 }
 0x1cd   : > { %v1755_v26 = vmul.f32 %v1754_v12, %v1751_v20  ;;  %v1757_v27 = vmul.f32 %v1754_v12, %v1753_v50 }
 0x1ce   : > { %v1756_v34 = vmul.f32 %v1754_v12, %v1752_v24  ;;  %v3227_v13 = vpop.f32.mrb[36].mxu0  ;;  %v3251_v19 = vpop.f32.mrb[36].mxu1 }
 0x1cf   : > { %v1766_v3 = vadd.f32 %v1761_v2, %v1755_v26  ;;  %v2004_v10 = vpop.f32.mrb[37].mxu0  ;;  %v1768_v30 = vadd.f32 %v1762_v17, %v1757_v27  ;;  %v4138_v32 = vadd.f32 %v3251_v19, %v4132_v28  ;;  %v2100_v33 = vpop.f32.mrb[37].mxu1  ;;  %v4141_v36 = vadd.f32 %v3227_v13, %v4132_v28 }
 0x1d0   : > { %v1767_v37 = vadd.f32 %v1764_v25, %v1756_v34  ;;  %v3228_v15 = vpop.f32.mrb[38].mxu0  ;;  %v4144_v39 = vadd.f32 %v4132_v28, %v2100_v33  ;;  %v3252_v40 = vpop.f32.mrb[38].mxu1  ;;  %v4153_v18 = vadd.f32 %v4132_v28, %v2004_v10 }
 0x1d1   : > { %4762 = vst [vmem:[#allocation12_spill] sm:$0xff] %v4138_v32  ;;  %4763 = vst [vmem:[#allocation13_spill] sm:$0xff] %v4141_v36  ;;  %v1790_v41 = vadd.f32 %v1784_v5, %v1766_v3  ;;  %v1792_v7 = vadd.f32 %v1786_v29, %v1768_v30  ;;  %v4147_v42 = vadd.f32 %v3228_v15, %v4132_v28  ;;  %v2007_v44 = vpop.f32.mrb[39].mxu0  ;;  %v2103_v46 = vpop.f32.mrb[39].mxu1 }
 0x1d2   : > { %4764 = vst [vmem:[#allocation14_spill] sm:$0xff] %v4144_v39  ;;  %v4150_v45 = vadd.f32 %v3252_v40, %v4132_v28  ;;  %4767 = vst [vmem:[#allocation17_spill] sm:$0xff] %v4153_v18  ;;  %v1791_v22 = vadd.f32 %v1785_v31, %v1767_v37  ;;  %v4156_v47 = vadd.f32 %v4132_v28, %v2007_v44 }
 0x1d3   : > { %4765 = vst [vmem:[#allocation15_spill] sm:$0xff] %v4147_v42  ;;  %v4159_v48 = vadd.f32 %v4132_v28, %v2103_v46  ;;  %1798 = vst [vmem:[%s4161_s18 + $0x8] sm:$0xf] %v1792_v7 }
 0x1d4   : > { %4766 = vst [vmem:[#allocation16_spill] sm:$0xff] %v4150_v45  ;;  %4768 = vst [vmem:[#allocation18_spill] sm:$0xff] %v4156_v47  ;;  %v1795_v53 = vcombine.low %v1790_v41, %v1791_v22 }
 0x1d6   : > { %1797 = vst [vmem:[%s4161_s18] sm:$0xff] %v1795_v53  ;;  %v3231_v56 = vpop.f32.mrb[40].mxu0  ;;  %v3255_v9 = vpop.f32.mrb[40].mxu1 }
 0x1d7   : > { %v2020_v57 = vpop.f32.mrb[41].mxu0  ;;  %v4174_v58 = vadd.f32 %v3255_v9, %v4132_v28  ;;  %v2116_v35 = vpop.f32.mrb[41].mxu1  ;;  %v4180_v62 = vadd.f32 %v3231_v56, %v4132_v28 }
 0x1d8   : > { %v3232_v60 = vpop.f32.mrb[42].mxu0  ;;  %v4177_v52 = vadd.f32 %v4132_v28, %v2116_v35  ;;  %v3256_v61 = vpop.f32.mrb[42].mxu1  ;;  %v4189_v4 = vadd.f32 %v4132_v28, %v2020_v57 }
 0x1d9   : > { %v4183_v63 = vadd.f32 %v3232_v60, %v4132_v28  ;;  %v2023_v2 = vpop.f32.mrb[43].mxu0  ;;  %v4186_v1 = vadd.f32 %v3256_v61, %v4132_v28  ;;  %v2119_v59 = vpop.f32.mrb[43].mxu1 }
 0x1da   : > { %4770 = vst [vmem:[#allocation20_spill] sm:$0xff] %v4189_v4  ;;  %v4192_v11 = vadd.f32 %v4132_v28, %v2023_v2  ;;  %v4195_v21 = vadd.f32 %v4132_v28, %v2119_v59 }
 0x1db   : > { %4769 = vst [vmem:[#allocation19_spill] sm:$0xff] %v4186_v1 }
 0x1dc   : > { %4771 = vst [vmem:[#allocation21_spill] sm:$0xff] %v4192_v11  ;;  %4772 = vst [vmem:[#allocation22_spill] sm:$0xff] %v4195_v21 }
 0x1de   : > { %v3235_v50 = vpop.f32.mrb[44].mxu0  ;;  %v2191_v23 = vpop.f32.mrb[44].mxu1 }
 0x1df   : > { %v2036_v8 = vpop.f32.mrb[45].mxu0  ;;  %v4206_v24 = vadd.f32 %v2191_v23, %v4117_v49  ;;  %v2193_v25 = vpop.f32.mrb[45].mxu1  ;;  %v4212_v5 = vadd.f32 %v3235_v50, %v4132_v28 }
 0x1e0   : > { %v3236_v26 = vpop.f32.mrb[46].mxu0  ;;  %v4209_v27 = vadd.f32 %v2193_v25, %v4117_v49  ;;  %v2195_v34 = vpop.f32.mrb[46].mxu1  ;;  %v4220_v10 = vadd.f32 %v4132_v28, %v2036_v8 }
 0x1e1   : > { %4774 = vst [vmem:[#allocation24_spill] sm:$0xff] %v4212_v5  ;;  %v4215_v13 = vadd.f32 %v3236_v26, %v4132_v28  ;;  %v2039_v29 = vpop.f32.mrb[47].mxu0  ;;  %v2196_v3 = vpop.f32.mrb[47].mxu1 }
 0x1e2   : > { %4773 = vst [vmem:[#allocation23_spill] sm:$0xff] %v4209_v27  ;;  %4776 = vst [vmem:[#allocation26_spill] sm:$0xff] %v4220_v10  ;;  %v4223_v30 = vadd.f32 %v4132_v28, %v2039_v29 }
 0x1e3   : > { %4775 = vst [vmem:[#allocation25_spill] sm:$0xff] %v4215_v13 }
 0x1e4   : > { %4777 = vst [vmem:[#allocation27_spill] sm:$0xff] %v4223_v30 }
 0x1e6   : > { %v3239_v37 = vpop.f32.mrb[48].mxu0  ;;  %v2242_v15 = vpop.f32.mrb[48].mxu1 }
 0x1e7   : > { %v2052_v40 = vpop.f32.mrb[49].mxu0  ;;  %v2243_v41 = vadd.f32 %v2242_v15, %v4119_v38  ;;  %v2244_v7 = vpop.f32.mrb[49].mxu1  ;;  %v4234_v53 = vadd.f32 %v3239_v37, %v4132_v28 }
 0x1e8   : > { %v3240_v44 = vpop.f32.mrb[50].mxu0  ;;  %v2245_v46 = vadd.f32 %v2244_v7, %v4119_v38  ;;  %v2246_v22 = vpop.f32.mrb[50].mxu1  ;;  %v4240_v35 = vadd.f32 %v4132_v28, %v2052_v40 }
 0x1e9   : > { %v4237_v56 = vadd.f32 %v3240_v44, %v4132_v28  ;;  %v2055_v9 = vpop.f32.mrb[51].mxu0  ;;  %v2247_v57 = vpop.f32.mrb[51].mxu1 }
 0x1ea   : > { %4778 = vst [vmem:[#allocation28_spill] sm:$0xff] %v4240_v35  ;;  %v4243_v60 = vadd.f32 %v4132_v28, %v2055_v9  ;;  %v2291_v61 = vcombine.low %v2243_v41, %v2245_v46 }
 0x1ec   : > { %2293 = vst [vmem:[#allocation2] sm:$0xff] %v2291_v61 }
 0x1ee   : > { %v3243_v50 = vpop.f32.mrb[52].mxu0  ;;  %v2283_v23 = vpop.f32.mrb[52].mxu1 }
 0x1ef   : > { %v2284_v8 = vadd.f32 %v2283_v23, %v4119_v38  ;;  %v2068_v25 = vpop.f32.mrb[53].mxu0  ;;  %v3261_v26 = vpop.f32.mrb[53].mxu1  ;;  %v4251_v3 = vadd.f32 %v3243_v50, %v4132_v28 }
 0x1f0   : > { %v3244_v34 = vpop.f32.mrb[54].mxu0  ;;  %v2286_v29 = vpop.f32.mrb[54].mxu1  ;;  %v4257_v41 = vadd.f32 %v4132_v28, %v2068_v25 }
 0x1f1   : > { %4779 = vst [vmem:[#allocation29_spill] sm:$0xff] %v4251_v3  ;;  %2294 = vst [vmem:[#allocation2 + $0x8] sm:$0xf] %v2284_v8  ;;  %v4254_v37 = vadd.f32 %v3244_v34, %v4132_v28  ;;  %v2071_v15 = vpop.f32.mrb[55].mxu0  ;;  %v3262_v40 = vpop.f32.mrb[55].mxu1 }
 0x1f2   : > { %4781 = vst [vmem:[#allocation31_spill] sm:$0xff] %v4257_v41  ;;  %v4260_v7 = vadd.f32 %v4132_v28, %v2071_v15 }
 0x1f3   : > { %4780 = vst [vmem:[#allocation30_spill] sm:$0xff] %v4254_v37 }
 0x1f4   : > { %4782 = vst [vmem:[#allocation32_spill] sm:$0xff] %v4260_v7 }
 0x1f6   : > { %v3247_v46 = vpop.f32.mrb[56].mxu0 }
 0x1f7   : > { %v2084_v22 = vpop.f32.mrb[57].mxu0  ;;  %v4267_v57 = vadd.f32 %v3247_v46, %v4132_v28 }
 0x1f8   : > { %v3248_v9 = vpop.f32.mrb[58].mxu0  ;;  %v4273_v23 = vadd.f32 %v4132_v28, %v2084_v22 }
 0x1f9   : > { %v4270_v61 = vadd.f32 %v3248_v9, %v4132_v28  ;;  %v2087_v50 = vpop.f32.mrb[59].mxu0 }
 0x1fa   : > { %4783 = vst [vmem:[#allocation33_spill] sm:$0xff] %v4273_v23  ;;  %v4276_v8 = vadd.f32 %v4132_v28, %v2087_v50 }
 0x1fc   : > { %4784 = vst [vmem:[#allocation34_spill] sm:$0xff] %v4276_v8 }
 0x1fd LB: >> { %v4785_v27 = vld [vmem:[#allocation23_spill] sm:$0xff]  ;;  %v4786_v47 = vld [vmem:[#allocation18_spill] sm:$0xff]  ;;  %v4787_v18 = vld [vmem:[#allocation17_spill] sm:$0xff]  ;;  %s3065_s2 = sshll.u32 %s3558_s26, 7  ;;  %v4796_v12 = vpack.c.bf16 %v4183_v63, %v4180_v62  ;;  %v4805_v2 = vpack.c.bf16 %v4237_v56, %v4234_v53  ;;  %v4815_v25 = vpack.c.bf16 %v4270_v61, %v4267_v57  ;;  %vm3573_vm12 = vmmov 0   ;;  %s2320_s26 = sadd.s32 1, %s3558_s26   ;;  %s3558_s26 = sphi %s4282_s26, %s2320_s26  }
 0x1fe   : >> { %v4788_v54 = vpack.c.bf16 %v4786_v47, %v4787_v18  ;;  %v4789_v49 = vpack.c.bf16 %v4785_v27, %v4785_v27  ;;  %s4295_s25 = sshra.s32 %s3065_s2, 7  ;;  %v4790_v42 = vld [vmem:[#allocation15_spill] sm:$0xff]  ;;  %v4791_v36 = vld [vmem:[#allocation13_spill] sm:$0xff]  ;;  %v4794_v4 = vld [vmem:[#allocation20_spill] sm:$0xff]  ;;  %p2317_p9 = scmp.ge.s32.totalorder %s2320_s26, 3  }
 0x1ff   : >> { %s3066_s1 = sshll.u32 %s4295_s25, 2  ;;  %v4792_v43 = vpack.c.bf16 %v4790_v42, %v4791_v36  ;;  %v4793_v11 = vld [vmem:[#allocation21_spill] sm:$0xff]  ;;  %v4797_v30 = vld [vmem:[#allocation27_spill] sm:$0xff]  ;;  %v4798_v10 = vld [vmem:[#allocation26_spill] sm:$0xff]  ;;  %s3309_s22 = smul.u32 (%p2317_p9), 192, %s3672_s17 }
 0x200   : >> { %3265 = vmatprep.mubr.msk.bf16.mxu0 %vm574_vm3, %v4788_v54  ;;  %2790 = vmatprep.mubr.bf16.mxu1 %v4789_v49  ;;  %s2325_s0 = scalar_lea.vmem [#allocation2], %s3066_s1  ;;  %v4795_v17 = vpack.c.bf16 %v4793_v11, %v4794_v4  ;;  %v4799_v33 = vpack.c.bf16 %v4797_v30, %v4798_v10  ;;  %v4800_v13 = vld [vmem:[#allocation25_spill] sm:$0xff]  ;;  %v4801_v5 = vld [vmem:[#allocation24_spill] sm:$0xff]  ;;  %v4807_v41 = vld [vmem:[#allocation31_spill] sm:$0xff]  ;;  %s2853_s27 = scalar_lea.vmem %s4161_s18, %s3066_s1 [#allocation6] }
 0x201   : >> { %v2326_v28 = vld [vmem:[%s2325_s0] sm:$0xf]  ;;  %v4802_v31 = vpack.c.bf16 %v4800_v13, %v4801_v5  ;;  %v4803_v35 = vld [vmem:[#allocation28_spill] sm:$0xff]  ;;  %v4809_v37 = vld [vmem:[#allocation30_spill] sm:$0xff]  ;;  %s2873_s28 = sshll.u32 (%p2317_p9), %s4161_s18, 4  ;;  %s4661_s19 = scalar_lea.hbm (%p2317_p9), %s4713_s14, %s3309_s22  ;;  %s2874_s28 = int_to_ptr.vmem [resolvable:$true] %s2873_s28 }
 0x202   : >> { %v2327_v34 = vpack.c.bf16 %v2326_v28, %v2326_v28  ;;  %v4804_v59 = vpack.c.bf16 %v4243_v60, %v4803_v35  ;;  %v4806_v7 = vld [vmem:[#allocation32_spill] sm:$0xff]  ;;  %v4810_v3 = vld [vmem:[#allocation29_spill] sm:$0xff]  ;;  %v4816_v39 = vld [vmem:[#allocation14_spill] sm:$0xff]  ;;  %s2859_s2 = scalar_lea.sflag (%p2317_p9), [#allocation4], %s502_s20  ;;  %s3484_s25 = scalar_lea.vmem (%p2317_p9), %s2874_s28, 192 }
 0x203   : >> { %v4808_v44 = vpack.c.bf16 %v4806_v7, %v4807_v41  ;;  %v4811_v38 = vpack.c.bf16 %v4809_v37, %v4810_v3  ;;  %v4812_v8 = vld [vmem:[#allocation34_spill] sm:$0xff]  ;;  %v4813_v23 = vld [vmem:[#allocation33_spill] sm:$0xff]  ;;  %v4817_v55 = vpack.c.bf16 %v4159_v48, %v4816_v39  ;;  %v4818_v45 = vld [vmem:[#allocation16_spill] sm:$0xff]  ;;  %p3485_p10 = scmp.ne.s32.totalorder (%p2317_p9), %s2874_s28, %s3484_s25  ;;  %s3575_s26 = smov (%p2317_p9), [#allocation6]  }
 0x204   : >> { %3307 = vmatprep.subr.msk.bf16.mxu0 %vm578_vm2, %v2327_v34  ;;  %v2377_v29 = vsel %vm578_vm2, %v2327_v34, 0  ;;  %v4814_v26 = vpack.c.bf16 %v4812_v8, %v4813_v23  ;;  %v4819_v32 = vld [vmem:[#allocation12_spill] sm:$0xff]  ;;  %v4821_v21 = vld [vmem:[#allocation22_spill] sm:$0xff]  ;;  %v4823_v1 = vld [vmem:[#allocation19_spill] sm:$0xff]  ;;  %s3488_s1 = sshll.u32 (%p2317_p9), %s3575_s26, 4  ;;  %s3489_s1 = int_to_ptr.vmem [resolvable:$false] %s3488_s1 }
 0x205   : >> { %3264 = vmatpush3.bf16.msra.mxu0 %v2377_v29  ;;  %v4820_v51 = vpack.c.bf16 %v4818_v45, %v4819_v32  ;;  %v4822_v20 = vpack.c.bf16 %v4821_v21, %v4177_v52  ;;  %v4824_v14 = vpack.c.bf16 %v4823_v1, %v4174_v58  ;;  %p3486_p12 = pnand (%p2317_p9), %p3485_p10, %p3689_p5  ;;  %s3490_s0 = scalar_lea.vmem (%p2317_p9), %s3489_s1, 384 }
 0x206   : > { %p3491_p0 = scmp.lt.s32.totalorder (%p2317_p9), %s2874_s28, %s3489_s1  ;;  %p3492_p1 = scmp.lt.s32.totalorder (%p2317_p9), %s3490_s0, %s3484_s25 }
 0x207   : > { %p3487_p13 = pneg (%p2317_p9), %p3486_p12 }
 0x208   : >> { %3266 = vmatmul.mubr.msk.bf16.vlgmr.msra.gmra.mrb[0].mxu0 %vm574_vm3, %v4792_v43  ;;  %p3493_p2 = por (%p2317_p9), %p3492_p1, %p3491_p0 }
 0x209   : >> { %3269 = vmatprep.mubr.msk.bf16.mxu0 %vm574_vm3, %v4795_v17 }
 0x20a   : > { %p3494_p3 = pnand (%p2317_p9), %p3493_p2, %p3487_p13 }
 0x210   : >> { %3270 = vmatmul.mubr.msk.bf16.gmra.mrb[4].mxu0 %vm574_vm3, %v4796_v12 }
 0x211   : >> { %3273 = vmatprep.mubr.msk.bf16.mxu0 %vm574_vm3, %v4799_v33 }
 0x218   : >> { %3274 = vmatmul.mubr.msk.bf16.gmra.mrb[8].mxu0 %vm574_vm3, %v4802_v31 }
 0x219   : >> { %3277 = vmatprep.mubr.msk.bf16.mxu0 %vm574_vm3, %v4804_v59 }
 0x220   : >> { %3278 = vmatmul.mubr.msk.bf16.gmra.mrb[12].mxu0 %vm574_vm3, %v4805_v2 }
 0x221   : >> { %3281 = vmatprep.mubr.msk.bf16.mxu0 %vm574_vm3, %v4808_v44 }
 0x228   : >> { %3282 = vmatmul.mubr.msk.bf16.gmra.mrb[16].mxu0 %vm574_vm3, %v4811_v38 }
 0x229   : >> { %3285 = vmatprep.mubr.msk.bf16.mxu0 %vm574_vm3, %v4814_v26 }
 0x230   : >> { %3286 = vmatmul.mubr.msk.bf16.gmra.mrb[20].mxu0 %vm574_vm3, %v4815_v25 }
 0x231   : >> { %3289 = vmatprep.mubr.msk.bf16.mxu0 %vm574_vm3, %v4817_v55 }
 0x238   : >> { %3290 = vmatmul.mubr.msk.bf16.gmra.mrb[24].mxu0 %vm574_vm3, %v4820_v51 }
 0x239   : >> { %3293 = vmatprep.mubr.msk.bf16.mxu0 %vm574_vm3, %v4822_v20 }
 0x240   : >> { %3294 = vmatmul.mubr.msk.bf16.gmra.mrb[28].mxu0 %vm574_vm3, %v4824_v14 }
 0x2db   : >> { %v3267_v15 = vpop.f32.mrb[0].mxu0 }
 0x2dc   : >> { %v2413_v40 = vpop.f32.mrb[1].mxu0  ;;  %v4362_v50 = vmul.f32 0.5, %v3267_v15 }
 0x2dd   : >> { %v3268_v46 = vpop.f32.mrb[2].mxu0  ;;  %v4366_v29 = vmul.f32 0.5, %v2413_v40 }
 0x2de   : >> { %v2416_v22 = vpop.f32.mrb[3].mxu0  ;;  %v4370_v17 = vmul.f32 0.5, %v3268_v46 }
 0x2df   : >> { %v4376_v26 = vmul.f32 0.5, %v2416_v22 }
 0x2e3   : >> { %v3271_v9 = vpop.f32.mrb[4].mxu0 }
 0x2e4   : >> { %v4364_v28 = vmul.f32 0.5, %v3271_v9  ;;  %v2429_v34 = vpop.f32.mrb[5].mxu0 }
 0x2e5   : >> { %v4368_v2 = vmul.f32 0.5, %v2429_v34  ;;  %v3272_v12 = vpop.f32.mrb[6].mxu0 }
 0x2e6   : >> { %v2574_v14 = vmax.f32 %v4362_v50, %v4364_v28  ;;  %v4374_v20 = vmul.f32 0.5, %v3272_v12  ;;  %v2432_v25 = vpop.f32.mrb[7].mxu0 }
 0x2e7   : >> { %v2572_v15 = vmax.f32 %v4366_v29, %v4368_v2  ;;  %v4380_v9 = vmul.f32 0.5, %v2432_v25 }
 0x2e8   : >> { %v2575_v40 = vmax.f32 %v4370_v17, %v4374_v20 }
 0x2e9   : >> { %v2573_v46 = vmax.f32 %v4376_v26, %v4380_v9 }
 0x2eb   : >> { %v3275_v34 = vpop.f32.mrb[8].mxu0 }
 0x2ec   : >> { %v4386_v31 = vmul.f32 0.5, %v3275_v34  ;;  %v2445_v33 = vpop.f32.mrb[9].mxu0 }
 0x2ed   : >> { %v4388_v12 = vmul.f32 0.5, %v2445_v33  ;;  %v3276_v38 = vpop.f32.mrb[10].mxu0 }
 0x2ee   : >> { %v2578_v22 = vmax.f32 %v2574_v14, %v4386_v31  ;;  %v4391_v43 = vmul.f32 0.5, %v3276_v38  ;;  %v2448_v44 = vpop.f32.mrb[11].mxu0 }
 0x2ef   : >> { %v2576_v25 = vmax.f32 %v2572_v15, %v4388_v12  ;;  %v4394_v49 = vmul.f32 0.5, %v2448_v44 }
 0x2f0   : >> { %v2579_v51 = vmax.f32 %v2575_v40, %v4391_v43 }
 0x2f1   : >> { %v2577_v54 = vmax.f32 %v2573_v46, %v4394_v49 }
 0x2f3   : >> { %v3279_v55 = vpop.f32.mrb[12].mxu0 }
 0x2f4   : >> { %v4398_v34 = vmul.f32 0.5, %v3279_v55  ;;  %v2461_v59 = vpop.f32.mrb[13].mxu0 }
 0x2f5   : >> { %v4400_v33 = vmul.f32 0.5, %v2461_v59  ;;  %v3280_v19 = vpop.f32.mrb[14].mxu0 }
 0x2f6   : >> { %v2582_v14 = vmax.f32 %v2578_v22, %v4398_v34  ;;  %v4403_v38 = vmul.f32 0.5, %v3280_v19  ;;  %v2464_v1 = vpop.f32.mrb[15].mxu0 }
 0x2f7   : >> { %v2580_v15 = vmax.f32 %v2576_v25, %v4400_v33  ;;  %v4406_v44 = vmul.f32 0.5, %v2464_v1 }
 0x2f8   : >> { %v2583_v40 = vmax.f32 %v2579_v51, %v4403_v38 }
 0x2f9   : >> { %v2581_v46 = vmax.f32 %v2577_v54, %v4406_v44 }
 0x2fb   : >> { %v3283_v3 = vpop.f32.mrb[16].mxu0 }
 0x2fc   : >> { %v4410_v55 = vmul.f32 0.5, %v3283_v3  ;;  %v2477_v4 = vpop.f32.mrb[17].mxu0 }
 0x2fd   : >> { %v4412_v59 = vmul.f32 0.5, %v2477_v4  ;;  %v3284_v5 = vpop.f32.mrb[18].mxu0 }
 0x2fe   : >> { %v2586_v22 = vmax.f32 %v2582_v14, %v4410_v55  ;;  %v4415_v19 = vmul.f32 0.5, %v3284_v5  ;;  %v2480_v7 = vpop.f32.mrb[19].mxu0 }
 0x2ff   : >> { %v2584_v25 = vmax.f32 %v2580_v15, %v4412_v59  ;;  %v4418_v1 = vmul.f32 0.5, %v2480_v7 }
 0x300   : >> { %v2587_v51 = vmax.f32 %v2583_v40, %v4415_v19 }
 0x301   : >> { %v2585_v54 = vmax.f32 %v2581_v46, %v4418_v1 }
 0x303   : >> { %v3287_v8 = vpop.f32.mrb[20].mxu0 }
 0x304   : >> { %v4422_v3 = vmul.f32 0.5, %v3287_v8  ;;  %v2493_v10 = vpop.f32.mrb[21].mxu0 }
 0x305   : >> { %v4424_v4 = vmul.f32 0.5, %v2493_v10  ;;  %v3288_v11 = vpop.f32.mrb[22].mxu0 }
 0x306   : >> { %v2590_v14 = vmax.f32 %v2586_v22, %v4422_v3  ;;  %v4427_v5 = vmul.f32 0.5, %v3288_v11  ;;  %v2496_v13 = vpop.f32.mrb[23].mxu0 }
 0x307   : >> { %v2588_v15 = vmax.f32 %v2584_v25, %v4424_v4  ;;  %v4430_v7 = vmul.f32 0.5, %v2496_v13 }
 0x308   : >> { %v2591_v40 = vmax.f32 %v2587_v51, %v4427_v5 }
 0x309   : >> { %v2589_v46 = vmax.f32 %v2585_v54, %v4430_v7 }
 0x30b   : >> { %v3291_v18 = vpop.f32.mrb[24].mxu0 }
 0x30c   : >> { %v4434_v8 = vmul.f32 0.5, %v3291_v18  ;;  %v2509_v21 = vpop.f32.mrb[25].mxu0 }
 0x30d   : >> { %v4436_v10 = vmul.f32 0.5, %v2509_v21  ;;  %v3292_v23 = vpop.f32.mrb[26].mxu0 }
 0x30e   : >> { %v2594_v22 = vmax.f32 %v2590_v14, %v4434_v8  ;;  %v4439_v11 = vmul.f32 0.5, %v3292_v23  ;;  %v2512_v27 = vpop.f32.mrb[27].mxu0 }
 0x30f   : >> { %v2592_v25 = vmax.f32 %v2588_v15, %v4436_v10  ;;  %v4442_v13 = vmul.f32 0.5, %v2512_v27 }
 0x310   : >> { %v2595_v51 = vmax.f32 %v2591_v40, %v4439_v11 }
 0x311   : >> { %v2593_v54 = vmax.f32 %v2589_v46, %v4442_v13 }
 0x313   : >> { %v3295_v30 = vpop.f32.mrb[28].mxu0 }
 0x314   : >> { %v4446_v18 = vmul.f32 0.5, %v3295_v30  ;;  %v2525_v32 = vpop.f32.mrb[29].mxu0 }
 0x315   : >> { %v4448_v21 = vmul.f32 0.5, %v2525_v32  ;;  %v3296_v35 = vpop.f32.mrb[30].mxu0 }
 0x316   : >> { %v2598_v14 = vmax.f32 %v2594_v22, %v4446_v18  ;;  %v4451_v23 = vmul.f32 0.5, %v3296_v35  ;;  %v2528_v36 = vpop.f32.mrb[31].mxu0 }
 0x317   : >> { %v2596_v15 = vmax.f32 %v2592_v25, %v4448_v21  ;;  %v4454_v27 = vmul.f32 0.5, %v2528_v36 }
 0x318   : >> { %v2599_v40 = vmax.f32 %v2595_v51, %v4451_v23 }
 0x319   : >> { %v2597_v46 = vmax.f32 %v2593_v54, %v4454_v27 }
 0x31a   : >> { %v2601_v37 = vmax.f32 %v2598_v14, %v2599_v40 }
 0x31b   : >> { %v2600_v30 = vmax.f32 %v2596_v15, %v2597_v46 }
 0x31d   : >> { %v2602_v39 = vmax.f32 %v2600_v30, %v2601_v37 }
 0x31f   : >> { %v2603_v41 = vrot.slane %v2602_v39, 4 }
 0x321   : >> { %v2604_v32 = vmax.f32 %v2602_v39, %v2603_v41 }
 0x323   : >> { %v2605_v42 = vrot.slane %v2604_v32, 2 }
 0x325   : >> { %v2606_v45 = vmax.f32 %v2604_v32, %v2605_v42 }
 0x327   : >> { %v2607_v47 = vrot.slane %v2606_v45, 1 }
 0x329   : >> { %v4458_v22 = vmax.f32 %v2606_v45, %v2607_v47 }
 0x32b   : >> { %v2609_v35 = vsub.f32 %v4366_v29, %v4458_v22  ;;  %v2610_v36 = vsub.f32 %v4376_v26, %v4458_v22  ;;  %v2611_v25 = vsub.f32 %v4362_v50, %v4458_v22  ;;  %v2612_v51 = vsub.f32 %v4370_v17, %v4458_v22 }
 0x32c   : >> { %v2613_v39 = vsub.f32 %v4368_v2, %v4458_v22  ;;  %v2614_v42 = vsub.f32 %v4380_v9, %v4458_v22  ;;  %v2615_v45 = vsub.f32 %v4364_v28, %v4458_v22  ;;  %v2616_v47 = vsub.f32 %v4374_v20, %v4458_v22 }
 0x32d   : >> { %v2617_v37 = vsub.f32 %v4388_v12, %v4458_v22  ;;  %v2618_v41 = vsub.f32 %v4394_v49, %v4458_v22  ;;  %v2619_v17 = vsub.f32 %v4386_v31, %v4458_v22  ;;  %v2620_v2 = vsub.f32 %v4391_v43, %v4458_v22 }
 0x32e   : >> { %v2621_v26 = vsub.f32 %v4400_v33, %v4458_v22  ;;  %v2622_v50 = vsub.f32 %v4406_v44, %v4458_v22  ;;  %v2623_v20 = vsub.f32 %v4398_v34, %v4458_v22  ;;  %v2624_v28 = vsub.f32 %v4403_v38, %v4458_v22 }
 0x32f   : >> { %v2625_v49 = vsub.f32 %v4412_v59, %v4458_v22  ;;  %v2626_v31 = vsub.f32 %v4418_v1, %v4458_v22  ;;  %v2627_v43 = vsub.f32 %v4410_v55, %v4458_v22  ;;  %v2628_v29 = vsub.f32 %v4415_v19, %v4458_v22 }
 0x330   : >> { %v2629_v9 = vsub.f32 %v4424_v4, %v4458_v22  ;;  %v2630_v12 = vsub.f32 %v4430_v7, %v4458_v22  ;;  %v2631_v34 = vsub.f32 %v4422_v3, %v4458_v22  ;;  %v2632_v33 = vsub.f32 %v4427_v5, %v4458_v22 }
 0x331   : >> { %v2633_v38 = vsub.f32 %v4436_v10, %v4458_v22  ;;  %v2634_v44 = vsub.f32 %v4442_v13, %v4458_v22  ;;  %v2641_v14 = vmul.f32 1.442695, %v2609_v35  ;;  %v2643_v15 = vmul.f32 1.442695, %v2610_v36 }
 0x332   : >> { %v2645_v40 = vmul.f32 1.442695, %v2611_v25  ;;  %v2647_v46 = vmul.f32 1.442695, %v2612_v51  ;;  %v2649_v30 = vmul.f32 1.442695, %v2613_v39 }
 0x333   : >> { %3403 = vpow2.f32 %v2641_v14  ;;  %v2651_v32 = vmul.f32 1.442695, %v2614_v42  ;;  %v2653_v59 = vmul.f32 1.442695, %v2615_v45  ;;  %v2655_v19 = vmul.f32 1.442695, %v2616_v47 }
 0x334   : >> { %3405 = vpow2.f32 %v2643_v15  ;;  %v2657_v1 = vmul.f32 1.442695, %v2617_v37  ;;  %v2659_v55 = vmul.f32 1.442695, %v2618_v41  ;;  %v2661_v4 = vmul.f32 1.442695, %v2619_v17 }
 0x335   : >> { %3407 = vpow2.f32 %v2645_v40  ;;  %v2663_v54 = vmul.f32 1.442695, %v2620_v2  ;;  %v2665_v35 = vmul.f32 1.442695, %v2621_v26  ;;  %v2667_v36 = vmul.f32 1.442695, %v2622_v50 }
 0x336   : >> { %3409 = vpow2.f32 %v2647_v46  ;;  %v2669_v51 = vmul.f32 1.442695, %v2623_v20  ;;  %v2671_v42 = vmul.f32 1.442695, %v2624_v28  ;;  %v2673_v47 = vmul.f32 1.442695, %v2625_v49 }
 0x337   : >> { %3411 = vpow2.f32 %v2649_v30  ;;  %v2675_v2 = vmul.f32 1.442695, %v2626_v31  ;;  %v2677_v50 = vmul.f32 1.442695, %v2627_v43  ;;  %v2683_v43 = vmul.f32 1.442695, %v2630_v12 }
 0x338   : >> { %3413 = vpow2.f32 %v2651_v32  ;;  %v2687_v7 = vmul.f32 1.442695, %v2632_v33  ;;  %v2689_v3 = vmul.f32 1.442695, %v2633_v38  ;;  %v2691_v5 = vmul.f32 1.442695, %v2634_v44 }
 0x339   : >> { %3415 = vpow2.f32 %v2653_v59  ;;  %v4825_v30 = vsub.f32 %v4434_v8, %v4458_v22 }
 0x33a   : >> { %3417 = vpow2.f32 %v2655_v19  ;;  %v2681_v19 = vmul.f32 1.442695, %v2629_v9 }
 0x33b   : >> { %3419 = vpow2.f32 %v2657_v1  ;;  %v2693_v10 = vmul.f32 1.442695, %v4825_v30 }
 0x33c   : >> { %3421 = vpow2.f32 %v2659_v55  ;;  %v2679_v55 = vmul.f32 1.442695, %v2628_v29  ;;  %v2685_v29 = vmul.f32 1.442695, %v2631_v34 }
 0x33d   : >> { %v4524_v25 = vpop.eup %3403  ;;  %3423 = vpow2.f32 %v2661_v4 }
 0x33e   : >> { %v4526_v39 = vpop.eup %3405  ;;  %3425 = vpow2.f32 %v2663_v54 }
 0x33f   : >> { %v4528_v45 = vpop.eup %3407  ;;  %3427 = vpow2.f32 %v2665_v35  ;;  %v2705_v37 = vadd.f32 %v4526_v39, %v4524_v25  ;;  %v2742_v41 = vpack.c.bf16 %v4526_v39, %v4524_v25 }
 0x340   : >> { %v4534_v17 = vpop.eup %3409  ;;  %3429 = vpow2.f32 %v2667_v36  ;;  %v4826_v36 = vsub.f32 %v4439_v11, %v4458_v22 }
 0x341   : >> { %v4536_v26 = vpop.eup %3411  ;;  %3431 = vpow2.f32 %v2669_v51  ;;  %v2706_v20 = vadd.f32 %v4528_v45, %v2705_v37  ;;  %v2743_v28 = vpack.c.bf16 %v4534_v17, %v4528_v45  ;;  %v4827_v51 = vsub.f32 %v4448_v21, %v4458_v22 }
 0x342   : >> { %v4541_v49 = vpop.eup %3413  ;;  %3433 = vpow2.f32 %v2671_v42  ;;  %v2695_v13 = vmul.f32 1.442695, %v4826_v36 }
 0x343   : >> { %v4543_v59 = vpop.eup %3415  ;;  %3435 = vpow2.f32 %v2673_v47  ;;  %v2707_v1 = vadd.f32 %v4534_v17, %v2706_v20  ;;  %v2744_v31 = vpack.c.bf16 %v4541_v49, %v4536_v26  ;;  %v2697_v8 = vmul.f32 1.442695, %v4827_v51 }
 0x344   : >> { %v4548_v4 = vpop.eup %3417  ;;  %3437 = vpow2.f32 %v2675_v2  ;;  %v4828_v2 = vsub.f32 %v4454_v27, %v4458_v22  ;;  %v4829_v20 = vsub.f32 %v4446_v18, %v4458_v22 }
 0x345   : >> { %v4553_v54 = vpop.eup %3419  ;;  %3439 = vpow2.f32 %v2677_v50  ;;  %v2708_v9 = vadd.f32 %v4536_v26, %v2707_v1  ;;  %v2745_v14 = vpack.c.bf16 %v4548_v4, %v4543_v59 }
 0x346   : >> { %v4561_v15 = vpop.eup %3421  ;;  %3441 = vpow2.f32 %v2679_v55  ;;  %v2699_v11 = vmul.f32 1.442695, %v4828_v2  ;;  %v2701_v55 = vmul.f32 1.442695, %v4829_v20 }
 0x347   : >> { %v4566_v12 = vpop.eup %3423  ;;  %3443 = vpow2.f32 %v2681_v19  ;;  %v2709_v34 = vadd.f32 %v4541_v49, %v2708_v9  ;;  %v2746_v40 = vpack.c.bf16 %v4561_v15, %v4553_v54 }
 0x348   : >> { %v4574_v46 = vpop.eup %3425  ;;  %3445 = vpow2.f32 %v2683_v43  ;;  %v4830_v43 = vsub.f32 %v4451_v23, %v4458_v22 }
 0x349   : >> { %v4579_v33 = vpop.eup %3427  ;;  %3447 = vpow2.f32 %v2685_v29  ;;  %v2710_v38 = vadd.f32 %v4543_v59, %v2709_v34  ;;  %v2747_v32 = vpack.c.bf16 %v4574_v46, %v4566_v12 }
 0x34a   : >> { %v4587_v35 = vpop.eup %3429  ;;  %3449 = vpow2.f32 %v2687_v7  ;;  %v2703_v29 = vmul.f32 1.442695, %v4830_v43 }
 0x34b   : >> { %v4592_v44 = vpop.eup %3431  ;;  %3451 = vpow2.f32 %v2689_v3  ;;  %v2711_v42 = vadd.f32 %v4548_v4, %v2710_v38  ;;  %v2748_v47 = vpack.c.bf16 %v4587_v35, %v4579_v33 }
 0x34c   : >> { %v4600_v37 = vpop.eup %3433  ;;  %3453 = vpow2.f32 %v2691_v5 }
 0x34d   : >> { %v3436_v50 = vpop.eup %3435  ;;  %3455 = vpow2.f32 %v2693_v10  ;;  %v2712_v21 = vadd.f32 %v4553_v54, %v2711_v42  ;;  %v2749_v19 = vpack.c.bf16 %v4600_v37, %v4592_v44 }
 0x34e   : >> { %v3438_v1 = vpop.eup %3437  ;;  %3457 = vpow2.f32 %v2695_v13 }
 0x34f   : >> { %v3440_v9 = vpop.eup %3439  ;;  %3459 = vpow2.f32 %v2697_v8  ;;  %v2713_v27 = vadd.f32 %v4561_v15, %v2712_v21  ;;  %v2750_v7 = vpack.c.bf16 %v3438_v1, %v3436_v50  ;;  %v4831_v15 = vpack.c.bf16 %v4206_v24, %v4206_v24 }
 0x350   : >> { %v3442_v3 = vpop.eup %3441  ;;  %3461 = vpow2.f32 %v2699_v11 }
 0x351   : >> { %v3444_v18 = vpop.eup %3443  ;;  %3463 = vpow2.f32 %v2701_v55  ;;  %v2714_v34 = vadd.f32 %v4566_v12, %v2713_v27  ;;  %3145 = vmatprep.subr.bf16.mxu1 %v2750_v7  ;;  %v2751_v5 = vpack.c.bf16 %v3442_v3, %v3440_v9 }
 0x352   : >> { %v3446_v30 = vpop.eup %3445  ;;  %3465 = vpow2.f32 %v2703_v29  ;;  %3146 = vmatpush3.bf16.msra.mxu1 %v2742_v41 }
 0x353   : >> { %v3448_v23 = vpop.eup %3447  ;;  %v2715_v22 = vadd.f32 %v4574_v46, %v2714_v34  ;;  %3147 = vmatprep.subr.bf16.mxu1 %v2751_v5  ;;  %v2752_v10 = vpack.c.bf16 %v3446_v30, %v3444_v18 }
 0x354   : >> { %v3450_v38 = vpop.eup %3449 }
 0x355   : >> { %v3452_v36 = vpop.eup %3451  ;;  %v2716_v13 = vadd.f32 %v4579_v33, %v2715_v22  ;;  %v2753_v51 = vpack.c.bf16 %v3450_v38, %v3448_v23  ;;  %v3574_v33 = vmov 0  }
 0x356   : >> { %v3454_v8 = vpop.eup %3453  ;;  %3148 = vmatpush3.bf16.msra.mxu1 %v2743_v28  ;;  %3402 = vset.pattern.permute.xlu0 %v3574_v33 }
 0x357   : >> { %v3456_v42 = vpop.eup %3455  ;;  %v2717_v2 = vadd.f32 %v4587_v35, %v2716_v13  ;;  %3149 = vmatprep.subr.bf16.mxu1 %v2752_v10  ;;  %v2754_v25 = vpack.c.bf16 %v3454_v8, %v3452_v36  ;;  %2803 = vperm.xlu0 %3402, %v4048_v0  }
 0x358   : >> { %v3458_v39 = vpop.eup %3457 }
 0x359   : >> { %v3460_v41 = vpop.eup %3459  ;;  %v2718_v11 = vadd.f32 %v4592_v44, %v2717_v2  ;;  %v2755_v20 = vpack.c.bf16 %v3458_v39, %v3456_v42 }
 0x35a   : >> { %v3462_v55 = vpop.eup %3461  ;;  %3150 = vmatpush3.bf16.msra.mxu1 %v2744_v31 }
 0x35b   : >> { %v3464_v21 = vpop.eup %3463  ;;  %v2719_v43 = vadd.f32 %v4600_v37, %v2718_v11  ;;  %3151 = vmatprep.subr.bf16.mxu1 %v2753_v51  ;;  %v2756_v45 = vpack.c.bf16 %v3462_v55, %v3460_v41 }
 0x35c   : >> { %v3466_v17 = vpop.eup %3465 }
 0x35d   : >> { %v2720_v28 = vadd.f32 %v3436_v50, %v2719_v43  ;;  %v2757_v29 = vpack.c.bf16 %v3466_v17, %v3464_v21 }
 0x35e   : >> { %3152 = vmatpush3.bf16.msra.mxu1 %v2745_v14 }
 0x35f   : >> { %v2721_v27 = vadd.f32 %v3438_v1, %v2720_v28  ;;  %3153 = vmatprep.subr.bf16.mxu1 %v2754_v25  ;;  %v3572_v1 = vmov 0.0   ;;  %v2854_v25 = vld [vmem:[%s2853_s27] sm:$0xf] }
 0x361   : >> { %v2722_v44 = vadd.f32 %v3440_v9, %v2721_v27 }
 0x362   : >> { %3154 = vmatpush3.bf16.msra.mxu1 %v2746_v40 }
 0x363   : >> { %v2723_v26 = vadd.f32 %v3442_v3, %v2722_v44  ;;  %3155 = vmatprep.subr.bf16.mxu1 %v2755_v20 }
 0x365   : >> { %v2724_v49 = vadd.f32 %v3444_v18, %v2723_v26 }
 0x366   : >> { %3156 = vmatpush3.bf16.msra.mxu1 %v2747_v32 }
 0x367   : >> { %v2725_v31 = vadd.f32 %v3446_v30, %v2724_v49  ;;  %3157 = vmatprep.subr.bf16.mxu1 %v2756_v45 }
 0x369   : >> { %v2726_v37 = vadd.f32 %v3448_v23, %v2725_v31 }
 0x36a   : >> { %3158 = vmatpush3.bf16.msra.mxu1 %v2748_v47 }
 0x36b   : >> { %v2727_v59 = vadd.f32 %v3450_v38, %v2726_v37  ;;  %3159 = vmatprep.subr.bf16.mxu1 %v2757_v29 }
 0x36d   : >> { %v2728_v4 = vadd.f32 %v3452_v36, %v2727_v59 }
 0x36e   : >> { %3160 = vmatpush3.bf16.msra.mxu1 %v2749_v19 }
 0x36f   : >> { %v2729_v54 = vadd.f32 %v3454_v8, %v2728_v4  ;;  %3297 = vmatprep.subr.bf16.mxu1 %v3572_v1 }
 0x371   : >> { %v2730_v14 = vadd.f32 %v3456_v42, %v2729_v54  ;;  %2791 = vmatmul.mubr.bf16.vlgmr.msra.gmra.mrb[0].mxu1 %v4831_v15 }
 0x372   : >> { %3299 = vmatprep.mubr.msk.bf16.mxu1 %vm3573_vm12, %v3572_v1 }
 0x373   : >> { %v2731_v40 = vadd.f32 %v3458_v39, %v2730_v14 }
 0x375   : >> { %v2732_v12 = vadd.f32 %v3460_v41, %v2731_v40 }
 0x377   : >> { %v2733_v46 = vadd.f32 %v3462_v55, %v2732_v12 }
 0x379   : >> { %v2734_v32 = vadd.f32 %v3464_v21, %v2733_v46 }
 0x37b   : >> { %v2735_v50 = vadd.f32 %v3466_v17, %v2734_v32 }
 0x37d   : >> { %v2736_v35 = vrot.slane %v2735_v50, 4 }
 0x37f   : >> { %v2737_v47 = vadd.f32 %v2736_v35, %v2735_v50 }
 0x381   : >> { %v2738_v19 = vrot.slane %v2737_v47, 2 }
 0x383   : >> { %v2739_v9 = vadd.f32 %v2738_v19, %v2737_v47 }
 0x385   : >> { %v2740_v7 = vrot.slane %v2739_v9, 1 }
 0x387   : >> { %v2741_v3 = vadd.f32 %v2740_v7, %v2739_v9 }
 0x389   : >> { %3467 = vrcp.f32 %v2741_v3 }
 0x393   : >> { %v3468_v23 = vpop.eup %3467 }
 0x3d6   : >> { %v2804_v13 = vpop.permute.xlu0 %2803 }
 0x444   : >> { %v3161_v18 = vpop.f32.mrb[0].mxu1 }
 0x445   : >> { %v3162_v34 = vpop.f32.mrb[1].mxu1 }
 0x446   : >> { %v3163_v5 = vadd.f32 %v3162_v34, %v3161_v18  ;;  %v3164_v30 = vpop.f32.mrb[2].mxu1 }
 0x447   : >> { %v3165_v22 = vpop.f32.mrb[3].mxu1 }
 0x448   : >> { %v2799_v10 = vmul.f32 %v3468_v23, %v3163_v5 }
 0x44a   : >> { %v2800_v38 = vpack.c.bf16 %v2799_v10, %v2799_v10 }
 0x44c   : >> { %v2810_v36 = vsel %vm578_vm2, %v2800_v38, 0 }
 0x44d   : >> { %3298 = vmatpush3.bf16.msra.mxu1 %v2810_v36 }
 0x450   : >> { %3300 = vmatmul.mubr.msk.bf16.vlgmr.msra.gmra.mrb[4].mxu1 %vm574_vm3, %v4043_v6 }
 0x523   : >> { %v2846_v51 = vpop.f32.mrb[4].mxu1 }
 0x524   : >> { %v3301_v8 = vpop.f32.mrb[5].mxu1  ;;  %v2847_v42 = vadd.f32 %v2846_v51, %v2804_v13  ;;  %2319 = sbr.rel (!%p2317_p9) target bundleno = 509 (0x1fd), region = 139 }
 0x525   : >> { %v2849_v2 = vpop.f32.mrb[6].mxu1 }
 0x526   : >> { %v2855_v39 = vmul.f32 %v2847_v42, %v3825_v16  ;;  %v3302_v41 = vpop.f32.mrb[7].mxu1 }
 0x528   : >> { %v2856_v11 = vadd.f32 %v2855_v39, %v2854_v25 }
 0x52a   : >> { %2857 = vst [vmem:[%s2853_s27] sm:$0xf] %v2856_v11 }
 0x52b   : > { %3497 = shalt.err (!%p3494_p3)
}
 0x52c   : > { %s3498_s17 = scalar_lea.hbm %s4661_s19, 192  ;;  %s3502_s27 = scalar_lea.hbm %s4713_s14, 384 }
 0x52d   : > { %p3499_p4 = scmp.ne.s32.totalorder %s4661_s19, %s3498_s17  ;;  %p3503_p11 = scmp.lt.u32.totalorder %s4661_s19, %s4713_s14 }
 0x52e   : > { %p3504_p9 = scmp.lt.u32.totalorder %s3502_s27, %s3498_s17  ;;  %p3506_p12 = scmp.lt.u32.totalorder %s3498_s17, %s4661_s19 }
 0x52f   : > { %p3500_p7 = pnand %p3499_p4, %p3689_p5 }
 0x530   : > { %p3505_p10 = por %p3504_p9, %p3503_p11 }
 0x531   : > { %p3501_p8 = pneg %p3500_p7 }
 0x532   : > { %p3507_p13 = por %p3506_p12, %p3505_p10 }
 0x534   : > { %p3508_p0 = pnand %p3507_p13, %p3501_p8 }
 0x536   : > { %3511 = shalt.err (!%p3508_p0)
}
 0x537   : > { %3314 = dma.vmem_to_hbm [thread:$0]  (%p3689_p5), %s2874_s28, 192, %s4661_s19, %s2859_s2  }
 0x538 PF: > { %p3326_p1 = scmp.ge.s32.totalorder %s3554_s16, 2  ;;  %s2885_s15 = sand.u32 1, %s3542_s29  }
 0x539   : > { %s2886_s25 = scalar_lea.sflag [#allocation4], %s2885_s15 }
 0x53a   : > { %p3321_p2 = pnand %p3326_p1, %p3693_p6 }
 0x53c   : > { %3537 = dma.done.wait (!%p3321_p2), %s2886_s25, 192  }
 0x53d   : > { %3539 = vsyncadd (!%p3321_p2), %s2886_s25, 4294967104  ;;  %s4832_s16 = sld [smem:[#allocation10_spill]]  ;;  %s4833_s26 = sld [smem:[#allocation9_spill]] }
 0x53e   : > { %s4834_s15 = sld [smem:[#allocation11_spill]]  ;;  %s4835_s29 = smov %s3546_s30 }
 0x543   : > { %p25_p3 = scmp.ge.s32.totalorder %s4832_s16, 4   ;;  %s4836_s30 = smov %s4833_s26 }
 0x545   :  { %27 = sbr.rel (!%p25_p3) target bundleno = 8 (0x8), region = 150 }
 0x54c   :  { %2891 = vsyncpa [#allocation4], 1 }
 0x54d   :  { %2893 = vsyncpa [#allocation4 + $0x1], 1 }
 0x54e   :  { %2894 = vsyncpa [#allocation5], 1 }
 0x54f   :  { %2896 = vsyncpa [#allocation5 + $0x1], 1 }

</bundles_post_ra>
